<compile_context>
chip_gen: v6e
topology: v6e:2x2x1
jax: 0.10.0
libtpu: 0.0.40
codegen_flags: <defaults>
</compile_context>

<pallas_src>
import jax
import jax.numpy as jnp
from jax.experimental import pallas as pl
from jax.experimental.pallas import tpu as pltpu

# ---- small, forward-consistent shapes ----
B = 2            # batch
CIN = 4          # input channels
H = W = 16       # spatial
F = 64           # backbone feature dim (stand-in for fc.in_features)
H1, H2, H3 = 512, 256, 128
NUM_CLASSES = 8

HW = H * W                   # 256
KK = 9 * CIN                 # im2col contraction size (3*3*CIN = 36)


# ---------------------------------------------------------------------------
# Single fused kernel: proxy backbone (batched im2col conv + ReLU + GAP) + MLP
# head.  No grid: everything lives in VMEM for one program.
# ---------------------------------------------------------------------------
def diamond_fused_kernel(patches_ref, wc_ref, bc_ref,
                         w1, b1, w2_hbm, b2, w3, b3, w4, b4,
                         out_ref, w2_vmem, w2_sem):
    # patches_ref: (B*H*W, KK) f32   wrapper-built im2col slab, (kh,kw,cin)-major
    # wc_ref:      (KK, F)     f32   conv weight in matching im2col layout
    # bc_ref:      (1, F)      f32
    # w1/w3/w4:    bf16 head weights (VMEM); w2_hbm: bf16 in HBM (pl.ANY)
    # b1..b4:      f32 biases
    # out_ref:     (B, NUM_CLASSES) f32
    # w2_vmem:     VMEM (H1, H2) bf16 scratch; w2_sem: DMA semaphore

    # Kick off the largest weight fetch (w2, ~256 KB bf16) now; it overlaps the
    # conv matmul, GAP and the first head layer and is waited right before use.
    w2_copy = pltpu.make_async_copy(w2_hbm, w2_vmem, w2_sem)
    w2_copy.start()

    # Proxy backbone: one batched im2col matmul, bias + ReLU.
    conv = jnp.dot(patches_ref[...], wc_ref[...],
                   preferred_element_type=jnp.float32)          # (B*HW, F)
    conv = jnp.maximum(conv + bc_ref[...], 0.0)

    # Global average pool per batch element -> (B, F), kept in vregs.
    feats = jnp.sum(conv.reshape(B, HW, F), axis=1) * (1.0 / float(HW))

    # Fused MLP head: bf16 weights, f32 accumulation.
    h = jnp.dot(feats.astype(jnp.bfloat16), w1[...],
                preferred_element_type=jnp.float32) + b1[...]
    h = jnp.maximum(h, 0.0)

    w2_copy.wait()
    h = jnp.dot(h.astype(jnp.bfloat16), w2_vmem[...],
                preferred_element_type=jnp.float32) + b2[...]
    h = jnp.maximum(h, 0.0)

    h = jnp.dot(h.astype(jnp.bfloat16), w3[...],
                preferred_element_type=jnp.float32) + b3[...]
    h = jnp.maximum(h, 0.0)

    # Dropout(0.4) -> identity at inference time.
    out_ref[...] = jnp.dot(h.astype(jnp.bfloat16), w4[...],
                           preferred_element_type=jnp.float32) + b4[...]


# ---------------------------------------------------------------------------
# Wrapper: cheap wrapper-side im2col (lane-dense slab), bf16 weight casts,
# then a single no-grid pallas_call.
# ---------------------------------------------------------------------------
def diamond_forward(x_nchw, params):
    (conv_w, conv_b, w1, b1, w2, b2, w3, b3, w4, b4) = params

    # NCHW -> NHWC, zero-pad for "same" 3x3, pack the 9 taps (kh,kw,cin)-major.
    x = jnp.transpose(x_nchw, (0, 2, 3, 1)).astype(jnp.float32)
    xpad = jnp.pad(x, ((0, 0), (1, 1), (1, 1), (0, 0)))
    taps = [xpad[:, kh:kh + H, kw:kw + W, :] for kh in range(3) for kw in range(3)]
    patches = jnp.concatenate(taps, axis=-1).reshape(B * HW, KK)      # (512, 36) f32

    # Conv weight (3,3,CIN,F) -> (KK, F) matching the patch ordering above.
    wc = conv_w.reshape(KK, F)

    # Halve the head-weight DMA: bf16 weights, f32 biases/accumulation.
    w1b = w1.astype(jnp.bfloat16)
    w2b = w2.astype(jnp.bfloat16)
    w3b = w3.astype(jnp.bfloat16)
    w4b = w4.astype(jnp.bfloat16)

    vmem = pl.BlockSpec(memory_space=pltpu.MemorySpace.VMEM)
    hbm = pl.BlockSpec(memory_space=pl.ANY)      # w2: manual DMA inside the kernel

    return pl.pallas_call(
        diamond_fused_kernel,
        out_shape=jax.ShapeDtypeStruct((B, NUM_CLASSES), jnp.float32),
        in_specs=[vmem, vmem, vmem,              # patches, wc, bc
                  vmem, vmem,                    # w1, b1
                  hbm, vmem,                     # w2 (HBM), b2
                  vmem, vmem,                    # w3, b3
                  vmem, vmem],                   # w4, b4
        out_specs=vmem,
        scratch_shapes=[
            pltpu.VMEM((H1, H2), jnp.bfloat16),  # w2 landing buffer
            pltpu.SemaphoreType.DMA,             # its completion semaphore
        ],
    )(patches, wc, conv_b, w1b, b1, w2b, b2, w3b, b3, w4b, b4)


# ---------------------------------------------------------------------------
# Pure-JAX reference (f32 throughout) for a numerical sanity check.
# ---------------------------------------------------------------------------
def reference_forward(x_nchw, params):
    (conv_w, conv_b, w1, b1, w2, b2, w3, b3, w4, b4) = params
    hp = jax.lax.Precision.HIGHEST
    x = jnp.transpose(x_nchw, (0, 2, 3, 1)).astype(jnp.float32)
    y = jax.lax.conv_general_dilated(
        x, conv_w, window_strides=(1, 1), padding="SAME",
        dimension_numbers=("NHWC", "HWIO", "NHWC"), precision=hp)
    y = jnp.maximum(y + conv_b.reshape(1, 1, 1, F), 0.0)
    f = jnp.mean(y, axis=(1, 2))
    h = jnp.maximum(jnp.dot(f, w1, precision=hp) + b1, 0.0)
    h = jnp.maximum(jnp.dot(h, w2, precision=hp) + b2, 0.0)
    h = jnp.maximum(jnp.dot(h, w3, precision=hp) + b3, 0.0)
    return jnp.dot(h, w4, precision=hp) + b4


def init_params(key):
    ks = jax.random.split(key, 10)
    scale = 0.05
    conv_w = scale * jax.random.normal(ks[0], (3, 3, CIN, F), jnp.float32)
    conv_b = scale * jax.random.normal(ks[1], (1, F), jnp.float32)
    w1 = scale * jax.random.normal(ks[2], (F, H1), jnp.float32)
    b1 = scale * jax.random.normal(ks[3], (1, H1), jnp.float32)
    w2 = scale * jax.random.normal(ks[4], (H1, H2), jnp.float32)
    b2 = scale * jax.random.normal(ks[5], (1, H2), jnp.float32)
    w3 = scale * jax.random.normal(ks[6], (H2, H3), jnp.float32)
    b3 = scale * jax.random.normal(ks[7], (1, H3), jnp.float32)
    w4 = scale * jax.random.normal(ks[8], (H3, NUM_CLASSES), jnp.float32)
    b4 = scale * jax.random.normal(ks[9], (1, NUM_CLASSES), jnp.float32)
    return (conv_w, conv_b, w1, b1, w2, b2, w3, b3, w4, b4)


if __name__ == "__main__":
    key = jax.random.PRNGKey(0)
    k_x, k_p = jax.random.split(key)
    # PyTorch-convention NCHW input.
    x = jax.random.normal(k_x, (B, CIN, H, W), jnp.float32)
    params = init_params(k_p)

    fwd = jax.jit(diamond_forward)
    out = jax.block_until_ready(fwd(x, params))
    assert out.shape == (B, NUM_CLASSES), out.shape

    ref = reference_forward(x, params)
    max_err = float(jnp.max(jnp.abs(out - ref)))
    # Slightly looser tolerance than pure-f32 because head weights are bf16.
    assert jnp.allclose(out, ref, atol=2e-2, rtol=2e-2), max_err

    print("KERNEL_OK")
</pallas_src>

<mosaic_0001>
module attributes {stable_mosaic.version = 11 : i64} {
  func.func @diamond_fused_kernel(%arg0: memref<512x36xf32, #tpu.memory_space<vmem>>, %arg1: memref<36x64xf32, #tpu.memory_space<vmem>>, %arg2: memref<1x64xf32, #tpu.memory_space<vmem>>, %arg3: memref<64x512xbf16, #tpu.memory_space<vmem>>, %arg4: memref<1x512xf32, #tpu.memory_space<vmem>>, %arg5: memref<512x256xbf16, #tpu.memory_space<any>>, %arg6: memref<1x256xf32, #tpu.memory_space<vmem>>, %arg7: memref<256x128xbf16, #tpu.memory_space<vmem>>, %arg8: memref<1x128xf32, #tpu.memory_space<vmem>>, %arg9: memref<128x8xbf16, #tpu.memory_space<vmem>>, %arg10: memref<1x8xf32, #tpu.memory_space<vmem>>, %arg11: memref<2x8xf32, #tpu.memory_space<vmem>>, %arg12: memref<512x256xbf16, #tpu.memory_space<vmem>>, %arg13: memref<!tpu.dma_semaphore, #tpu.memory_space<semaphore_mem>>) attributes {dimension_semantics = [], scalar_prefetch = 0 : i64, scratch_operands = 2 : i64, tpu.core_type = #tpu.core_type<tc>} {
    tpu.enqueue_dma source(%arg5 : memref<512x256xbf16, #tpu.memory_space<any>>) target(%arg12 : memref<512x256xbf16, #tpu.memory_space<vmem>>) target_semaphore(%arg13 : memref<!tpu.dma_semaphore, #tpu.memory_space<semaphore_mem>>)
    %c0 = arith.constant 0 : index
    %c0_0 = arith.constant 0 : index
    %0 = vector.load %arg0[%c0, %c0_0] : memref<512x36xf32, #tpu.memory_space<vmem>>, vector<512x36xf32>
    %c0_1 = arith.constant 0 : index
    %c0_2 = arith.constant 0 : index
    %1 = vector.load %arg1[%c0_1, %c0_2] : memref<36x64xf32, #tpu.memory_space<vmem>>, vector<36x64xf32>
    %cst = arith.constant dense<0.000000e+00> : vector<512x64xf32>
    %2 = tpu.matmul %0, %1, %cst {dimension_numbers = #tpu.dot_dimension_numbers<[1], [0], [0], [1], [0, 0, 1, 1], [], []>} : vector<512x36xf32>, vector<36x64xf32>, vector<512x64xf32> -> vector<512x64xf32>
    %c0_3 = arith.constant 0 : index
    %c0_4 = arith.constant 0 : index
    %3 = vector.load %arg2[%c0_3, %c0_4] : memref<1x64xf32, #tpu.memory_space<vmem>>, vector<1x64xf32>
    %4 = vector.broadcast %3 : vector<1x64xf32> to vector<512x64xf32>
    %5 = arith.addf %2, %4 : vector<512x64xf32>
    %cst_5 = arith.constant 0.000000e+00 : f32
    %6 = vector.broadcast %cst_5 : f32 to vector<512x64xf32>
    %7 = arith.maximumf %5, %6 : vector<512x64xf32>
    %8 = vector.shape_cast %7 : vector<512x64xf32> to vector<2x256x64xf32>
    %cst_6 = arith.constant dense<0.000000e+00> : vector<2x64xf32>
    %9 = vector.multi_reduction <add>, %8, %cst_6 [1] : vector<2x256x64xf32> to vector<2x64xf32>
    %cst_7 = arith.constant 3.906250e-03 : f32
    %10 = vector.broadcast %cst_7 : f32 to vector<2x64xf32>
    %11 = arith.mulf %9, %10 : vector<2x64xf32>
    %12 = arith.truncf %11 : vector<2x64xf32> to vector<2x64xbf16>
    %c0_8 = arith.constant 0 : index
    %c0_9 = arith.constant 0 : index
    %13 = vector.load %arg3[%c0_8, %c0_9] : memref<64x512xbf16, #tpu.memory_space<vmem>>, vector<64x512xbf16>
    %cst_10 = arith.constant dense<0.000000e+00> : vector<2x512xf32>
    %14 = tpu.matmul %12, %13, %cst_10 {dimension_numbers = #tpu.dot_dimension_numbers<[1], [0], [0], [1], [0, 0, 1, 1], [], []>} : vector<2x64xbf16>, vector<64x512xbf16>, vector<2x512xf32> -> vector<2x512xf32>
    %c0_11 = arith.constant 0 : index
    %c0_12 = arith.constant 0 : index
    %15 = vector.load %arg4[%c0_11, %c0_12] : memref<1x512xf32, #tpu.memory_space<vmem>>, vector<1x512xf32>
    %16 = vector.broadcast %15 : vector<1x512xf32> to vector<2x512xf32>
    %17 = arith.addf %14, %16 : vector<2x512xf32>
    %cst_13 = arith.constant 0.000000e+00 : f32
    %18 = vector.broadcast %cst_13 : f32 to vector<2x512xf32>
    %19 = arith.maximumf %17, %18 : vector<2x512xf32>
    tpu.wait_dma2 semaphore(%arg13 : memref<!tpu.dma_semaphore, #tpu.memory_space<semaphore_mem>>) src(%arg5 : memref<512x256xbf16, #tpu.memory_space<any>>) dst(%arg12 : memref<512x256xbf16, #tpu.memory_space<vmem>>)
    %20 = arith.truncf %19 : vector<2x512xf32> to vector<2x512xbf16>
    %c0_14 = arith.constant 0 : index
    %c0_15 = arith.constant 0 : index
    %21 = vector.load %arg12[%c0_14, %c0_15] : memref<512x256xbf16, #tpu.memory_space<vmem>>, vector<512x256xbf16>
    %cst_16 = arith.constant dense<0.000000e+00> : vector<2x256xf32>
    %22 = tpu.matmul %20, %21, %cst_16 {dimension_numbers = #tpu.dot_dimension_numbers<[1], [0], [0], [1], [0, 0, 1, 1], [], []>} : vector<2x512xbf16>, vector<512x256xbf16>, vector<2x256xf32> -> vector<2x256xf32>
    %c0_17 = arith.constant 0 : index
    %c0_18 = arith.constant 0 : index
    %23 = vector.load %arg6[%c0_17, %c0_18] : memref<1x256xf32, #tpu.memory_space<vmem>>, vector<1x256xf32>
    %24 = vector.broadcast %23 : vector<1x256xf32> to vector<2x256xf32>
    %25 = arith.addf %22, %24 : vector<2x256xf32>
    %cst_19 = arith.constant 0.000000e+00 : f32
    %26 = vector.broadcast %cst_19 : f32 to vector<2x256xf32>
    %27 = arith.maximumf %25, %26 : vector<2x256xf32>
    %28 = arith.truncf %27 : vector<2x256xf32> to vector<2x256xbf16>
    %c0_20 = arith.constant 0 : index
    %c0_21 = arith.constant 0 : index
    %29 = vector.load %arg7[%c0_20, %c0_21] : memref<256x128xbf16, #tpu.memory_space<vmem>>, vector<256x128xbf16>
    %cst_22 = arith.constant dense<0.000000e+00> : vector<2x128xf32>
    %30 = tpu.matmul %28, %29, %cst_22 {dimension_numbers = #tpu.dot_dimension_numbers<[1], [0], [0], [1], [0, 0, 1, 1], [], []>} : vector<2x256xbf16>, vector<256x128xbf16>, vector<2x128xf32> -> vector<2x128xf32>
    %c0_23 = arith.constant 0 : index
    %c0_24 = arith.constant 0 : index
    %31 = vector.load %arg8[%c0_23, %c0_24] : memref<1x128xf32, #tpu.memory_space<vmem>>, vector<1x128xf32>
    %32 = vector.broadcast %31 : vector<1x128xf32> to vector<2x128xf32>
    %33 = arith.addf %30, %32 : vector<2x128xf32>
    %cst_25 = arith.constant 0.000000e+00 : f32
    %34 = vector.broadcast %cst_25 : f32 to vector<2x128xf32>
    %35 = arith.maximumf %33, %34 : vector<2x128xf32>
    %36 = arith.truncf %35 : vector<2x128xf32> to vector<2x128xbf16>
    %c0_26 = arith.constant 0 : index
    %c0_27 = arith.constant 0 : index
    %37 = vector.load %arg9[%c0_26, %c0_27] : memref<128x8xbf16, #tpu.memory_space<vmem>>, vector<128x8xbf16>
    %cst_28 = arith.constant dense<0.000000e+00> : vector<2x8xf32>
    %38 = tpu.matmul %36, %37, %cst_28 {dimension_numbers = #tpu.dot_dimension_numbers<[1], [0], [0], [1], [0, 0, 1, 1], [], []>} : vector<2x128xbf16>, vector<128x8xbf16>, vector<2x8xf32> -> vector<2x8xf32>
    %c0_29 = arith.constant 0 : index
    %c0_30 = arith.constant 0 : index
    %39 = vector.load %arg10[%c0_29, %c0_30] : memref<1x8xf32, #tpu.memory_space<vmem>>, vector<1x8xf32>
    %40 = vector.broadcast %39 : vector<1x8xf32> to vector<2x8xf32>
    %41 = arith.addf %38, %40 : vector<2x8xf32>
    %c0_31 = arith.constant 0 : index
    %c0_32 = arith.constant 0 : index
    %42 = vector.load %arg11[%c0_31, %c0_32] : memref<2x8xf32, #tpu.memory_space<vmem>>, vector<2x8xf32>
    tpu.vector_store %arg11[%c0_31, %c0_32], %41 {strides = array<i32>} : memref<2x8xf32, #tpu.memory_space<vmem>>, vector<2x8xf32>,
    return
  }
}

</mosaic_0001>

<bundles_post_ra>
// kernel: diamond_forward.1
= control target key start
LH: loop header
LB: loop body
LE: loop exit
PB: predicated region body
PF: predicated region fallthrough
CT: control target
= control target key end

     0   :  { %16 = vsyncpa [#allocation5], 0  ;;  %s3656_s0 = inlined_call_operand.vmem [shape: f32[512,36], index: 0, kind: input, shape index: {}]   ;;  %s3657_s1 = inlined_call_operand.vmem [shape: f32[36,64], index: 1, kind: input, shape index: {}]   ;;  %s3658_s2 = inlined_call_operand.vmem [shape: f32[1,64], index: 2, kind: input, shape index: {}]   ;;  %s3659_s3 = inlined_call_operand.vmem [shape: bf16[64,512], index: 3, kind: input, shape index: {}]   ;;  %s3660_s4 = inlined_call_operand.vmem [shape: f32[1,512], index: 4, kind: input, shape index: {}]   ;;  %s3661_s5 = inlined_call_operand.vmem [shape: bf16[512,256], index: 5, kind: input, shape index: {}]   ;;  %s3662_s6 = inlined_call_operand.vmem [shape: f32[1,256], index: 6, kind: input, shape index: {}]   ;;  %s3663_s7 = inlined_call_operand.vmem [shape: bf16[256,128], index: 7, kind: input, shape index: {}]   ;;  %s3664_s8 = inlined_call_operand.vmem [shape: f32[1,128], index: 8, kind: input, shape index: {}]   ;;  %s3665_s9 = inlined_call_operand.vmem [shape: bf16[128,8], index: 9, kind: input, shape index: {}]   ;;  %s3666_s10 = inlined_call_operand.vmem [shape: f32[1,8], index: 10, kind: input, shape index: {}]   ;;  %s3667_s11 = inlined_call_operand.hbm [shape: f32[2,8], index: 11, kind: output, shape index: {}]  }
   0x1   :  { %v2638_v0 = vld [vmem:[%s3661_s5] sm:$0xff]  ;;  %v2643_v1 = vld [vmem:[%s3661_s5 + $0x8] sm:$0xff]  ;;  %v2648_v2 = vld [vmem:[%s3661_s5 + $0x10] sm:$0xff] }
   0x2   :  { %v2653_v3 = vld [vmem:[%s3661_s5 + $0x18] sm:$0xff]  ;;  %v2658_v4 = vld [vmem:[%s3661_s5 + $0x20] sm:$0xff]  ;;  %v2663_v5 = vld [vmem:[%s3661_s5 + $0x28] sm:$0xff] }
   0x3   :  { %v2668_v6 = vld [vmem:[%s3661_s5 + $0x30] sm:$0xff]  ;;  %v2673_v7 = vld [vmem:[%s3661_s5 + $0x38] sm:$0xff]  ;;  %v2678_v8 = vld [vmem:[%s3661_s5 + $0x40] sm:$0xff] }
   0x4   :  { %v2683_v9 = vld [vmem:[%s3661_s5 + $0x48] sm:$0xff]  ;;  %v2688_v10 = vld [vmem:[%s3661_s5 + $0x50] sm:$0xff]  ;;  %v2693_v11 = vld [vmem:[%s3661_s5 + $0x58] sm:$0xff] }
   0x5   :  { %v2698_v12 = vld [vmem:[%s3661_s5 + $0x60] sm:$0xff]  ;;  %v2703_v13 = vld [vmem:[%s3661_s5 + $0x68] sm:$0xff]  ;;  %v2708_v14 = vld [vmem:[%s3661_s5 + $0x70] sm:$0xff] }
   0x6   :  { %v2713_v15 = vld [vmem:[%s3661_s5 + $0x78] sm:$0xff]  ;;  %v2718_v16 = vld [vmem:[%s3661_s5 + $0x80] sm:$0xff]  ;;  %v2723_v17 = vld [vmem:[%s3661_s5 + $0x88] sm:$0xff] }
   0x7   :  { %3693 = vst [vmem:[#allocation9_spill] sm:$0xff] %v2718_v16  ;;  %3694 = vst [vmem:[#allocation10_spill] sm:$0xff] %v2723_v17  ;;  %v2728_v18 = vld [vmem:[%s3661_s5 + $0x90] sm:$0xff]  ;;  %v2733_v19 = vld [vmem:[%s3661_s5 + $0x98] sm:$0xff] }
   0x8   :  { %3695 = vst [vmem:[#allocation11_spill] sm:$0xff] %v2728_v18  ;;  %3696 = vst [vmem:[#allocation12_spill] sm:$0xff] %v2733_v19  ;;  %v2738_v20 = vld [vmem:[%s3661_s5 + $0xa0] sm:$0xff]  ;;  %v2743_v21 = vld [vmem:[%s3661_s5 + $0xa8] sm:$0xff] }
   0x9   :  { %3697 = vst [vmem:[#allocation13_spill] sm:$0xff] %v2738_v20  ;;  %3698 = vst [vmem:[#allocation14_spill] sm:$0xff] %v2743_v21  ;;  %v2748_v22 = vld [vmem:[%s3661_s5 + $0xb0] sm:$0xff]  ;;  %v2753_v23 = vld [vmem:[%s3661_s5 + $0xb8] sm:$0xff] }
   0xa   :  { %3699 = vst [vmem:[#allocation15_spill] sm:$0xff] %v2748_v22  ;;  %3700 = vst [vmem:[#allocation16_spill] sm:$0xff] %v2753_v23  ;;  %v2758_v24 = vld [vmem:[%s3661_s5 + $0xc0] sm:$0xff]  ;;  %v2763_v25 = vld [vmem:[%s3661_s5 + $0xc8] sm:$0xff] }
   0xb   :  { %3701 = vst [vmem:[#allocation17_spill] sm:$0xff] %v2758_v24  ;;  %3702 = vst [vmem:[#allocation18_spill] sm:$0xff] %v2763_v25  ;;  %v2768_v26 = vld [vmem:[%s3661_s5 + $0xd0] sm:$0xff]  ;;  %v2773_v27 = vld [vmem:[%s3661_s5 + $0xd8] sm:$0xff] }
   0xc   :  { %3703 = vst [vmem:[#allocation19_spill] sm:$0xff] %v2768_v26  ;;  %3704 = vst [vmem:[#allocation20_spill] sm:$0xff] %v2773_v27  ;;  %v2778_v28 = vld [vmem:[%s3661_s5 + $0xe0] sm:$0xff]  ;;  %v2783_v29 = vld [vmem:[%s3661_s5 + $0xe8] sm:$0xff] }
   0xd   :  { %v2788_v30 = vld [vmem:[%s3661_s5 + $0xf0] sm:$0xff]  ;;  %v2793_v31 = vld [vmem:[%s3661_s5 + $0xf8] sm:$0xff]  ;;  %v2798_v32 = vld [vmem:[%s3661_s5 + $0x100] sm:$0xff] }
   0xe   :  { %v2803_v33 = vld [vmem:[%s3661_s5 + $0x108] sm:$0xff]  ;;  %v2808_v34 = vld [vmem:[%s3661_s5 + $0x110] sm:$0xff]  ;;  %v2813_v35 = vld [vmem:[%s3661_s5 + $0x118] sm:$0xff] }
   0xf   :  { %v2818_v36 = vld [vmem:[%s3661_s5 + $0x120] sm:$0xff]  ;;  %v2823_v37 = vld [vmem:[%s3661_s5 + $0x128] sm:$0xff]  ;;  %v2828_v38 = vld [vmem:[%s3661_s5 + $0x130] sm:$0xff] }
  0x10   :  { %v2833_v39 = vld [vmem:[%s3661_s5 + $0x138] sm:$0xff]  ;;  %v2838_v40 = vld [vmem:[%s3661_s5 + $0x140] sm:$0xff]  ;;  %v2843_v41 = vld [vmem:[%s3661_s5 + $0x148] sm:$0xff] }
  0x11   :  { %v2848_v42 = vld [vmem:[%s3661_s5 + $0x150] sm:$0xff]  ;;  %v2853_v43 = vld [vmem:[%s3661_s5 + $0x158] sm:$0xff]  ;;  %v2858_v44 = vld [vmem:[%s3661_s5 + $0x160] sm:$0xff] }
  0x12   :  { %v2863_v45 = vld [vmem:[%s3661_s5 + $0x168] sm:$0xff]  ;;  %v2868_v46 = vld [vmem:[%s3661_s5 + $0x170] sm:$0xff]  ;;  %v2873_v47 = vld [vmem:[%s3661_s5 + $0x178] sm:$0xff] }
  0x13   :  { %v2878_v48 = vld [vmem:[%s3661_s5 + $0x180] sm:$0xff]  ;;  %v2883_v49 = vld [vmem:[%s3661_s5 + $0x188] sm:$0xff]  ;;  %v2888_v50 = vld [vmem:[%s3661_s5 + $0x190] sm:$0xff] }
  0x14   :  { %3705 = vst [vmem:[#allocation21_spill] sm:$0xff] %v2878_v48  ;;  %3706 = vst [vmem:[#allocation22_spill] sm:$0xff] %v2883_v49  ;;  %v2893_v51 = vld [vmem:[%s3661_s5 + $0x198] sm:$0xff]  ;;  %v2898_v52 = vld [vmem:[%s3661_s5 + $0x1a0] sm:$0xff] }
  0x15   :  { %3707 = vst [vmem:[#allocation23_spill] sm:$0xff] %v2888_v50  ;;  %3708 = vst [vmem:[#allocation24_spill] sm:$0xff] %v2893_v51  ;;  %v2903_v53 = vld [vmem:[%s3661_s5 + $0x1a8] sm:$0xff]  ;;  %v2908_v54 = vld [vmem:[%s3661_s5 + $0x1b0] sm:$0xff] }
  0x16   :  { %3709 = vst [vmem:[#allocation25_spill] sm:$0xff] %v2898_v52  ;;  %3710 = vst [vmem:[#allocation26_spill] sm:$0xff] %v2903_v53  ;;  %v2913_v55 = vld [vmem:[%s3661_s5 + $0x1b8] sm:$0xff]  ;;  %v2918_v56 = vld [vmem:[%s3661_s5 + $0x1c0] sm:$0xff] }
  0x17   :  { %3711 = vst [vmem:[#allocation27_spill] sm:$0xff] %v2908_v54  ;;  %3712 = vst [vmem:[#allocation28_spill] sm:$0xff] %v2913_v55  ;;  %v2923_v57 = vld [vmem:[%s3661_s5 + $0x1c8] sm:$0xff]  ;;  %v2928_v58 = vld [vmem:[%s3661_s5 + $0x1d0] sm:$0xff] }
  0x18   :  { %3713 = vst [vmem:[#allocation29_spill] sm:$0xff] %v2918_v56  ;;  %3714 = vst [vmem:[#allocation30_spill] sm:$0xff] %v2923_v57  ;;  %v2933_v59 = vld [vmem:[%s3661_s5 + $0x1d8] sm:$0xff]  ;;  %v2938_v60 = vld [vmem:[%s3661_s5 + $0x1e0] sm:$0xff] }
  0x19   :  { %3715 = vst [vmem:[#allocation31_spill] sm:$0xff] %v2928_v58  ;;  %3716 = vst [vmem:[#allocation32_spill] sm:$0xff] %v2933_v59  ;;  %v2943_v61 = vld [vmem:[%s3661_s5 + $0x1e8] sm:$0xff]  ;;  %v2948_v62 = vld [vmem:[%s3661_s5 + $0x1f0] sm:$0xff] }
  0x1a   :  { %v2953_v63 = vld [vmem:[%s3661_s5 + $0x1f8] sm:$0xff] }
  0x1b   :  { %206 = vsyncadd [#allocation3], 8192  ;;  %v275_v48 = vld [vmem:[%s3657_s1 + $0x20] sm:$0xf]  ;;  %vm476_vm0 = vcmask 1043456   ;;  %v274_v49 = vld [vmem:[%s3657_s1 + $0x18] sm:$0xff] }
  0x1c   :  { %2369 = vmatprep.subr.msk.mxu0 %vm476_vm0, %v275_v48  ;;  %vm283_vm1 = vcmask 293888   ;;  %v273_v16 = vld [vmem:[%s3657_s1 + $0x10] sm:$0xff]  ;;  %v207_v17 = vld [vmem:[%s3656_s0] sm:$0xff]  ;;  %v272_v50 = vld [vmem:[%s3657_s1 + $0x8] sm:$0xff]  ;;  %vm929_vm2 = vcmask 523264   ;;  %vm1114_vm3 = vcmask 1041409  }
  0x1d   :  { %2370 = vmatpush3.msk.msra.mxu0 %vm476_vm0, %v275_v48  ;;  %2379 = vmatprep.mubr.msk.f32.mxu0 %vm283_vm1, %v207_v17  ;;  %v271_v48 = vld [vmem:[%s3657_s1] sm:$0xff]  ;;  %v208_v51 = vld [vmem:[%s3656_s0 + $0x8] sm:$0xff]  ;;  %v209_v17 = vld [vmem:[%s3656_s0 + $0x10] sm:$0xff] }
  0x1e   :  { %2371 = vmatprep.subr.mxu0 %v274_v49 }
  0x1f   :  { %2372 = vmatpush3.msra.mxu0 %v274_v49  ;;  %v211_v49 = vld [vmem:[%s3656_s0 + $0x20] sm:$0xff] }
  0x20   :  { %2373 = vmatprep.subr.mxu0 %v273_v16 }
  0x21   :  { %2374 = vmatpush3.msra.mxu0 %v273_v16  ;;  %v210_v16 = vld [vmem:[%s3656_s0 + $0x18] sm:$0xff] }
  0x22   :  { %2375 = vmatprep.subr.mxu0 %v272_v50 }
  0x23   :  { %2376 = vmatpush3.msra.mxu0 %v272_v50  ;;  %v212_v50 = vld [vmem:[%s3656_s0 + $0x28] sm:$0xff] }
  0x24   :  { %2377 = vmatprep.subr.mxu0 %v271_v48 }
  0x25   :  { %2378 = vmatpush3.msra.mxu0 %v271_v48  ;;  %v214_v48 = vld [vmem:[%s3656_s0 + $0x38] sm:$0xff] }
  0x26   :  { %2380 = vmatmul.mubr.msk.f32.vlgmr.msra.gmra.mxu0 %vm283_vm1, %v208_v51  ;;  %v213_v51 = vld [vmem:[%s3656_s0 + $0x30] sm:$0xff] }
  0x27   :  { %2382 = vmatprep.mubr.msk.f32.mxu0 %vm283_vm1, %v209_v17  ;;  %v215_v17 = vld [vmem:[%s3656_s0 + $0x40] sm:$0xff] }
  0x2a   :  { %2383 = vmatmul.mubr.msk.f32.gmra.mxu0 %vm283_vm1, %v210_v16  ;;  %v216_v16 = vld [vmem:[%s3656_s0 + $0x48] sm:$0xff] }
  0x2b   :  { %2385 = vmatprep.mubr.msk.f32.mxu0 %vm283_vm1, %v211_v49  ;;  %v217_v49 = vld [vmem:[%s3656_s0 + $0x50] sm:$0xff] }
  0x2e   :  { %2386 = vmatmul.mubr.msk.f32.gmra.mxu0 %vm283_vm1, %v212_v50  ;;  %v218_v50 = vld [vmem:[%s3656_s0 + $0x58] sm:$0xff] }
  0x2f   :  { %2388 = vmatprep.mubr.msk.f32.mxu0 %vm283_vm1, %v213_v51  ;;  %v219_v51 = vld [vmem:[%s3656_s0 + $0x60] sm:$0xff] }
  0x32   :  { %2389 = vmatmul.mubr.msk.f32.gmra.mxu0 %vm283_vm1, %v214_v48  ;;  %v220_v48 = vld [vmem:[%s3656_s0 + $0x68] sm:$0xff] }
  0x33   :  { %2391 = vmatprep.mubr.msk.f32.mxu0 %vm283_vm1, %v215_v17  ;;  %v221_v17 = vld [vmem:[%s3656_s0 + $0x70] sm:$0xff] }
  0x36   :  { %2392 = vmatmul.mubr.msk.f32.gmra.mxu0 %vm283_vm1, %v216_v16  ;;  %v222_v16 = vld [vmem:[%s3656_s0 + $0x78] sm:$0xff] }
  0x37   :  { %2394 = vmatprep.mubr.msk.f32.mxu0 %vm283_vm1, %v217_v49  ;;  %v223_v49 = vld [vmem:[%s3656_s0 + $0x80] sm:$0xff] }
  0x3a   :  { %2395 = vmatmul.mubr.msk.f32.gmra.mxu0 %vm283_vm1, %v218_v50  ;;  %v224_v50 = vld [vmem:[%s3656_s0 + $0x88] sm:$0xff] }
  0x3b   :  { %2397 = vmatprep.mubr.msk.f32.mxu0 %vm283_vm1, %v219_v51  ;;  %v225_v51 = vld [vmem:[%s3656_s0 + $0x90] sm:$0xff] }
  0x3e   :  { %2398 = vmatmul.mubr.msk.f32.gmra.mxu0 %vm283_vm1, %v220_v48  ;;  %v226_v48 = vld [vmem:[%s3656_s0 + $0x98] sm:$0xff] }
  0x3f   :  { %2400 = vmatprep.mubr.msk.f32.mxu0 %vm283_vm1, %v221_v17  ;;  %v227_v17 = vld [vmem:[%s3656_s0 + $0xa0] sm:$0xff] }
  0x42   :  { %2401 = vmatmul.mubr.msk.f32.gmra.mxu0 %vm283_vm1, %v222_v16  ;;  %v228_v16 = vld [vmem:[%s3656_s0 + $0xa8] sm:$0xff] }
  0x43   :  { %2403 = vmatprep.mubr.msk.f32.mxu0 %vm283_vm1, %v223_v49  ;;  %v229_v49 = vld [vmem:[%s3656_s0 + $0xb0] sm:$0xff] }
  0x46   :  { %2404 = vmatmul.mubr.msk.f32.gmra.mxu0 %vm283_vm1, %v224_v50  ;;  %v230_v50 = vld [vmem:[%s3656_s0 + $0xb8] sm:$0xff] }
  0x47   :  { %2406 = vmatprep.mubr.msk.f32.mxu0 %vm283_vm1, %v225_v51  ;;  %v231_v51 = vld [vmem:[%s3656_s0 + $0xc0] sm:$0xff] }
  0x4a   :  { %2407 = vmatmul.mubr.msk.f32.gmra.mxu0 %vm283_vm1, %v226_v48  ;;  %v232_v48 = vld [vmem:[%s3656_s0 + $0xc8] sm:$0xff] }
  0x4b   :  { %2409 = vmatprep.mubr.msk.f32.mxu0 %vm283_vm1, %v227_v17  ;;  %v233_v17 = vld [vmem:[%s3656_s0 + $0xd0] sm:$0xff] }
  0x4e   :  { %2410 = vmatmul.mubr.msk.f32.gmra.mxu0 %vm283_vm1, %v228_v16  ;;  %v234_v16 = vld [vmem:[%s3656_s0 + $0xd8] sm:$0xff] }
  0x4f   :  { %2412 = vmatprep.mubr.msk.f32.mxu0 %vm283_vm1, %v229_v49  ;;  %v235_v49 = vld [vmem:[%s3656_s0 + $0xe0] sm:$0xff] }
  0x52   :  { %2413 = vmatmul.mubr.msk.f32.gmra.mxu0 %vm283_vm1, %v230_v50  ;;  %v236_v50 = vld [vmem:[%s3656_s0 + $0xe8] sm:$0xff] }
  0x53   :  { %2415 = vmatprep.mubr.msk.f32.mxu0 %vm283_vm1, %v231_v51  ;;  %v237_v51 = vld [vmem:[%s3656_s0 + $0xf0] sm:$0xff] }
  0x56   :  { %2416 = vmatmul.mubr.msk.f32.gmra.mxu0 %vm283_vm1, %v232_v48  ;;  %v238_v48 = vld [vmem:[%s3656_s0 + $0xf8] sm:$0xff] }
  0x57   :  { %2418 = vmatprep.mubr.msk.f32.mxu0 %vm283_vm1, %v233_v17  ;;  %v239_v17 = vld [vmem:[%s3656_s0 + $0x100] sm:$0xff] }
  0x5a   :  { %2419 = vmatmul.mubr.msk.f32.gmra.mxu0 %vm283_vm1, %v234_v16  ;;  %v240_v16 = vld [vmem:[%s3656_s0 + $0x108] sm:$0xff] }
  0x5b   :  { %2421 = vmatprep.mubr.msk.f32.mxu0 %vm283_vm1, %v235_v49  ;;  %v241_v49 = vld [vmem:[%s3656_s0 + $0x110] sm:$0xff] }
  0x5e   :  { %2422 = vmatmul.mubr.msk.f32.gmra.mxu0 %vm283_vm1, %v236_v50  ;;  %v242_v50 = vld [vmem:[%s3656_s0 + $0x118] sm:$0xff] }
  0x5f   :  { %2424 = vmatprep.mubr.msk.f32.mxu0 %vm283_vm1, %v237_v51  ;;  %v243_v51 = vld [vmem:[%s3656_s0 + $0x120] sm:$0xff] }
  0x62   :  { %2425 = vmatmul.mubr.msk.f32.gmra.mxu0 %vm283_vm1, %v238_v48  ;;  %v244_v48 = vld [vmem:[%s3656_s0 + $0x128] sm:$0xff] }
  0x63   :  { %2427 = vmatprep.mubr.msk.f32.mxu0 %vm283_vm1, %v239_v17  ;;  %v245_v17 = vld [vmem:[%s3656_s0 + $0x130] sm:$0xff] }
  0x66   :  { %2428 = vmatmul.mubr.msk.f32.gmra.mxu0 %vm283_vm1, %v240_v16  ;;  %v246_v16 = vld [vmem:[%s3656_s0 + $0x138] sm:$0xff] }
  0x67   :  { %2430 = vmatprep.mubr.msk.f32.mxu0 %vm283_vm1, %v241_v49  ;;  %v247_v49 = vld [vmem:[%s3656_s0 + $0x140] sm:$0xff] }
  0x6a   :  { %2431 = vmatmul.mubr.msk.f32.gmra.mxu0 %vm283_vm1, %v242_v50  ;;  %v248_v50 = vld [vmem:[%s3656_s0 + $0x148] sm:$0xff] }
  0x6b   :  { %2433 = vmatprep.mubr.msk.f32.mxu0 %vm283_vm1, %v243_v51  ;;  %v249_v51 = vld [vmem:[%s3656_s0 + $0x150] sm:$0xff] }
  0x6e   :  { %2434 = vmatmul.mubr.msk.f32.gmra.mxu0 %vm283_vm1, %v244_v48  ;;  %v250_v48 = vld [vmem:[%s3656_s0 + $0x158] sm:$0xff] }
  0x6f   :  { %2436 = vmatprep.mubr.msk.f32.mxu0 %vm283_vm1, %v245_v17  ;;  %v251_v17 = vld [vmem:[%s3656_s0 + $0x160] sm:$0xff] }
  0x72   :  { %2437 = vmatmul.mubr.msk.f32.gmra.mxu0 %vm283_vm1, %v246_v16  ;;  %v252_v16 = vld [vmem:[%s3656_s0 + $0x168] sm:$0xff] }
  0x73   :  { %2439 = vmatprep.mubr.msk.f32.mxu0 %vm283_vm1, %v247_v49  ;;  %v253_v49 = vld [vmem:[%s3656_s0 + $0x170] sm:$0xff] }
  0x76   :  { %2440 = vmatmul.mubr.msk.f32.gmra.mxu0 %vm283_vm1, %v248_v50  ;;  %v254_v50 = vld [vmem:[%s3656_s0 + $0x178] sm:$0xff] }
  0x77   :  { %2442 = vmatprep.mubr.msk.f32.mxu0 %vm283_vm1, %v249_v51  ;;  %v255_v51 = vld [vmem:[%s3656_s0 + $0x180] sm:$0xff] }
  0x7a   :  { %2443 = vmatmul.mubr.msk.f32.gmra.mxu0 %vm283_vm1, %v250_v48  ;;  %v256_v48 = vld [vmem:[%s3656_s0 + $0x188] sm:$0xff] }
  0x7b   :  { %2445 = vmatprep.mubr.msk.f32.mxu0 %vm283_vm1, %v251_v17  ;;  %v257_v17 = vld [vmem:[%s3656_s0 + $0x190] sm:$0xff] }
  0x7e   :  { %2446 = vmatmul.mubr.msk.f32.gmra.mxu0 %vm283_vm1, %v252_v16  ;;  %v258_v16 = vld [vmem:[%s3656_s0 + $0x198] sm:$0xff] }
  0x7f   :  { %2448 = vmatprep.mubr.msk.f32.mxu0 %vm283_vm1, %v253_v49  ;;  %v259_v49 = vld [vmem:[%s3656_s0 + $0x1a0] sm:$0xff] }
  0x82   :  { %2449 = vmatmul.mubr.msk.f32.gmra.mxu0 %vm283_vm1, %v254_v50  ;;  %v260_v50 = vld [vmem:[%s3656_s0 + $0x1a8] sm:$0xff] }
  0x83   :  { %2451 = vmatprep.mubr.msk.f32.mxu0 %vm283_vm1, %v255_v51  ;;  %v261_v51 = vld [vmem:[%s3656_s0 + $0x1b0] sm:$0xff] }
  0x86   :  { %2452 = vmatmul.mubr.msk.f32.gmra.mxu0 %vm283_vm1, %v256_v48  ;;  %v262_v48 = vld [vmem:[%s3656_s0 + $0x1b8] sm:$0xff] }
  0x87   :  { %2454 = vmatprep.mubr.msk.f32.mxu0 %vm283_vm1, %v257_v17  ;;  %v263_v17 = vld [vmem:[%s3656_s0 + $0x1c0] sm:$0xff] }
  0x8a   :  { %2455 = vmatmul.mubr.msk.f32.gmra.mxu0 %vm283_vm1, %v258_v16  ;;  %v264_v16 = vld [vmem:[%s3656_s0 + $0x1c8] sm:$0xff] }
  0x8b   :  { %2457 = vmatprep.mubr.msk.f32.mxu0 %vm283_vm1, %v259_v49  ;;  %v265_v49 = vld [vmem:[%s3656_s0 + $0x1d0] sm:$0xff] }
  0x8e   :  { %2458 = vmatmul.mubr.msk.f32.gmra.mxu0 %vm283_vm1, %v260_v50  ;;  %v266_v50 = vld [vmem:[%s3656_s0 + $0x1d8] sm:$0xff] }
  0x8f   :  { %2460 = vmatprep.mubr.msk.f32.mxu0 %vm283_vm1, %v261_v51  ;;  %v267_v51 = vld [vmem:[%s3656_s0 + $0x1e0] sm:$0xff] }
  0x92   :  { %2461 = vmatmul.mubr.msk.f32.gmra.mxu0 %vm283_vm1, %v262_v48  ;;  %v268_v48 = vld [vmem:[%s3656_s0 + $0x1e8] sm:$0xff] }
  0x93   :  { %2463 = vmatprep.mubr.msk.f32.mxu0 %vm283_vm1, %v263_v17  ;;  %v269_v17 = vld [vmem:[%s3656_s0 + $0x1f0] sm:$0xff] }
  0x96   :  { %2464 = vmatmul.mubr.msk.f32.gmra.mxu0 %vm283_vm1, %v264_v16  ;;  %v270_v16 = vld [vmem:[%s3656_s0 + $0x1f8] sm:$0xff] }
  0x97   :  { %2466 = vmatprep.mubr.msk.f32.mxu0 %vm283_vm1, %v265_v49  ;;  %v3229_v49 = vld [vmem:[%s3658_s2] ss:$0 sm:$0xff] }
  0x9a   :  { %2467 = vmatmul.mubr.msk.f32.gmra.mxu0 %vm283_vm1, %v266_v50 }
  0x9b   :  { %2469 = vmatprep.mubr.msk.f32.mxu0 %vm283_vm1, %v267_v51 }
  0x9e   :  { %2470 = vmatmul.mubr.msk.f32.gmra.mxu0 %vm283_vm1, %v268_v48 }
  0x9f   :  { %2472 = vmatprep.mubr.msk.f32.mxu0 %vm283_vm1, %v269_v17 }
  0xa2   :  { %2473 = vmatmul.mubr.msk.f32.gmra.mxu0 %vm283_vm1, %v270_v16 }
  0xe6   :  { %v2381_v50 = vpop.f32.mrf.mxu0 }
  0xe7   :  { %v552_v51 = vadd.f32 %v2381_v50, %v3229_v49 }
  0xe8   :  { %v546_v18 = vpop.f32.mrf.mxu0 }
  0xe9   :  { %v866_v19 = vmax.f32 %v552_v51, 0.0  ;;  %v547_v48 = vadd.f32 %v3229_v49, %v546_v18  ;;  %v2499_v18 = vld [vmem:[%s3659_s3 + $0x64] ss:$16 sps:$4 sm:$0xff]  }
  0xea   :  { %v2384_v17 = vpop.f32.mrf.mxu0  ;;  %1208 = vmatprep.subr.bf16.mxu1 %v2499_v18 }
  0xeb   :  { %v865_v52 = vmax.f32 %v547_v48, 0.0  ;;  %v562_v53 = vadd.f32 %v2384_v17, %v3229_v49  ;;  %v931_v16 = vsel %vm929_vm2, %v866_v19, 0.0  ;;  %v2501_v19 = vld [vmem:[%s3659_s3 + $0x60] ss:$16 sps:$4 sm:$0xff]  }
  0xec   :  { %v556_v20 = vpop.f32.mrf.mxu0  ;;  %1209 = vmatpush1.bf16.msra.mxu1 %v2501_v19 }
  0xed   :  { %v930_v21 = vsel %vm929_vm2, %v865_v52, 0.0  ;;  %v557_v54 = vadd.f32 %v3229_v49, %v556_v20  ;;  %v868_v23 = vmax.f32 %v562_v53, 0.0 }
  0xee   :  { %v932_v55 = vadd.f32 %v931_v16, %v930_v21  ;;  %v2387_v22 = vpop.f32.mrf.mxu0 }
  0xef   :  { %v867_v50 = vmax.f32 %v557_v54, 0.0  ;;  %v572_v51 = vadd.f32 %v2387_v22, %v3229_v49  ;;  %v935_v52 = vsel %vm929_vm2, %v868_v23, 0.0 }
  0xf0   :  { %v566_v56 = vpop.f32.mrf.mxu0 }
  0xf1   :  { %v933_v48 = vsel %vm929_vm2, %v867_v50, 0.0  ;;  %v567_v17 = vadd.f32 %v3229_v49, %v566_v56  ;;  %v870_v53 = vmax.f32 %v572_v51, 0.0  ;;  %v2502_v56 = vld [vmem:[%s3659_s3 + $0x44] ss:$16 sps:$4 sm:$0xff]  }
  0xf2   :  { %v934_v20 = vadd.f32 %v933_v48, %v932_v55  ;;  %v2390_v21 = vpop.f32.mrf.mxu0  ;;  %v2504_v55 = vld [vmem:[%s3659_s3 + $0x40] ss:$16 sps:$4 sm:$0xff]   ;;  %1210 = vmatprep.subr.bf16.mxu1 %v2502_v56 }
  0xf3   :  { %v869_v22 = vmax.f32 %v567_v17, 0.0  ;;  %v582_v54 = vadd.f32 %v2390_v21, %v3229_v49  ;;  %v939_v18 = vsel %vm929_vm2, %v870_v53, 0.0  ;;  %1211 = vmatpush1.bf16.msra.mxu1 %v2504_v55 }
  0xf4   :  { %v936_v16 = vadd.f32 %v935_v52, %v934_v20  ;;  %v576_v57 = vpop.f32.mrf.mxu0 }
  0xf5   :  { %v937_v50 = vsel %vm929_vm2, %v869_v22, 0.0  ;;  %v577_v24 = vadd.f32 %v3229_v49, %v576_v57  ;;  %v872_v48 = vmax.f32 %v582_v54, 0.0  ;;  %v2505_v57 = vld [vmem:[%s3659_s3 + $0x24] ss:$16 sps:$4 sm:$0xff]  }
  0xf6   :  { %v938_v23 = vadd.f32 %v937_v50, %v936_v16  ;;  %v2393_v51 = vpop.f32.mrf.mxu0  ;;  %v2507_v16 = vld [vmem:[%s3659_s3 + $0x20] ss:$16 sps:$4 sm:$0xff]   ;;  %1212 = vmatprep.subr.bf16.mxu1 %v2505_v57 }
  0xf7   :  { %v871_v17 = vmax.f32 %v577_v24, 0.0  ;;  %v592_v19 = vadd.f32 %v2393_v51, %v3229_v49  ;;  %v2508_v24 = vld [vmem:[%s3659_s3 + $0x4] ss:$16 sps:$4 sm:$0xff]   ;;  %v943_v56 = vsel %vm929_vm2, %v872_v48, 0.0  ;;  %1213 = vmatpush1.bf16.msra.mxu1 %v2507_v16  ;;  %v2510_v51 = vld [vmem:[%s3659_s3] ss:$16 sps:$4 sm:$0xff]  }
  0xf8   :  { %v940_v20 = vadd.f32 %v939_v18, %v938_v23  ;;  %v586_v21 = vpop.f32.mrf.mxu0  ;;  %v3688_v18 = vmov 0   ;;  %1214 = vmatprep.subr.bf16.mxu1 %v2508_v24 }
  0xf9   :  { %v941_v52 = vsel %vm929_vm2, %v871_v17, 0.0  ;;  %v587_v22 = vadd.f32 %v3229_v49, %v586_v21  ;;  %v874_v50 = vmax.f32 %v592_v19, 0.0  ;;  %1232 = vmatprep.mubr.bf16.mxu1 %v3688_v18  ;;  %v2513_v21 = vld [vmem:[%s3659_s3 + $0x6c] ss:$16 sps:$4 sm:$0xff]  }
  0xfa   :  { %v942_v53 = vadd.f32 %v941_v52, %v940_v20  ;;  %v2396_v54 = vpop.f32.mrf.mxu0 }
  0xfb   :  { %v873_v55 = vmax.f32 %v587_v22, 0.0  ;;  %v602_v23 = vadd.f32 %v2396_v54, %v3229_v49  ;;  %v947_v22 = vsel %vm929_vm2, %v874_v50, 0.0  ;;  %1215 = vmatpush1.bf16.msra.mxu1 %v2510_v51 }
  0xfc   :  { %v944_v17 = vadd.f32 %v943_v56, %v942_v53  ;;  %v596_v20 = vpop.f32.mrf.mxu0  ;;  %1249 = vmatprep.subr.bf16.mxu1 %v2513_v21 }
  0xfd   :  { %v945_v48 = vsel %vm929_vm2, %v873_v55, 0.0  ;;  %v597_v19 = vadd.f32 %v3229_v49, %v596_v20  ;;  %v876_v16 = vmax.f32 %v602_v23, 0.0 }
  0xfe   :  { %v946_v57 = vadd.f32 %v945_v48, %v944_v17  ;;  %v2399_v52 = vpop.f32.mrf.mxu0 }
  0xff   :  { %v875_v54 = vmax.f32 %v597_v19, 0.0  ;;  %v612_v25 = vadd.f32 %v2399_v52, %v3229_v49  ;;  %v951_v20 = vsel %vm929_vm2, %v876_v16, 0.0 }
 0x100   :  { %v948_v53 = vadd.f32 %v947_v22, %v946_v57  ;;  %v606_v56 = vpop.f32.mrf.mxu0 }
 0x101   :  { %v949_v24 = vsel %vm929_vm2, %v875_v54, 0.0  ;;  %v607_v18 = vadd.f32 %v3229_v49, %v606_v56  ;;  %v878_v17 = vmax.f32 %v612_v25, 0.0 }
 0x102   :  { %v950_v58 = vadd.f32 %v949_v24, %v948_v53  ;;  %v2402_v55 = vpop.f32.mrf.mxu0 }
 0x103   :  { %v877_v48 = vmax.f32 %v607_v18, 0.0  ;;  %v622_v50 = vadd.f32 %v2402_v55, %v3229_v49  ;;  %v955_v22 = vsel %vm929_vm2, %v878_v17, 0.0 }
 0x104   :  { %v952_v23 = vadd.f32 %v951_v20, %v950_v58  ;;  %v616_v19 = vpop.f32.mrf.mxu0 }
 0x105   :  { %v953_v52 = vsel %vm929_vm2, %v877_v48, 0.0  ;;  %v617_v51 = vadd.f32 %v3229_v49, %v616_v19  ;;  %v880_v54 = vmax.f32 %v622_v50, 0.0 }
 0x106   :  { %v954_v57 = vadd.f32 %v953_v52, %v952_v23  ;;  %v2405_v21 = vpop.f32.mrf.mxu0 }
 0x107   :  { %v879_v56 = vmax.f32 %v617_v51, 0.0  ;;  %v632_v53 = vadd.f32 %v2405_v21, %v3229_v49  ;;  %v959_v20 = vsel %vm929_vm2, %v880_v54, 0.0 }
 0x108   :  { %v956_v24 = vadd.f32 %v955_v22, %v954_v57  ;;  %v626_v16 = vpop.f32.mrf.mxu0 }
 0x109   :  { %v957_v25 = vsel %vm929_vm2, %v879_v56, 0.0  ;;  %v627_v18 = vadd.f32 %v3229_v49, %v626_v16  ;;  %v882_v48 = vmax.f32 %v632_v53, 0.0 }
 0x10a   :  { %v958_v58 = vadd.f32 %v957_v25, %v956_v24  ;;  %v2408_v55 = vpop.f32.mrf.mxu0 }
 0x10b   :  { %v881_v19 = vmax.f32 %v627_v18, 0.0  ;;  %v642_v23 = vadd.f32 %v2408_v55, %v3229_v49  ;;  %v963_v22 = vsel %vm929_vm2, %v882_v48, 0.0 }
 0x10c   :  { %v960_v52 = vadd.f32 %v959_v20, %v958_v58  ;;  %v636_v17 = vpop.f32.mrf.mxu0 }
 0x10d   :  { %v961_v50 = vsel %vm929_vm2, %v881_v19, 0.0  ;;  %v637_v51 = vadd.f32 %v3229_v49, %v636_v17  ;;  %v884_v56 = vmax.f32 %v642_v23, 0.0 }
 0x10e   :  { %v962_v57 = vadd.f32 %v961_v50, %v960_v52  ;;  %v2411_v21 = vpop.f32.mrf.mxu0 }
 0x10f   :  { %v883_v16 = vmax.f32 %v637_v51, 0.0  ;;  %v652_v24 = vadd.f32 %v2411_v21, %v3229_v49  ;;  %v967_v20 = vsel %vm929_vm2, %v884_v56, 0.0 }
 0x110   :  { %v964_v25 = vadd.f32 %v963_v22, %v962_v57  ;;  %v646_v54 = vpop.f32.mrf.mxu0 }
 0x111   :  { %v965_v53 = vsel %vm929_vm2, %v883_v16, 0.0  ;;  %v647_v18 = vadd.f32 %v3229_v49, %v646_v54  ;;  %v886_v19 = vmax.f32 %v652_v24, 0.0 }
 0x112   :  { %v966_v58 = vadd.f32 %v965_v53, %v964_v25  ;;  %v2414_v55 = vpop.f32.mrf.mxu0 }
 0x113   :  { %v885_v17 = vmax.f32 %v647_v18, 0.0  ;;  %v662_v52 = vadd.f32 %v2414_v55, %v3229_v49  ;;  %v971_v22 = vsel %vm929_vm2, %v886_v19, 0.0 }
 0x114   :  { %v968_v50 = vadd.f32 %v967_v20, %v966_v58  ;;  %v656_v48 = vpop.f32.mrf.mxu0 }
 0x115   :  { %v969_v23 = vsel %vm929_vm2, %v885_v17, 0.0  ;;  %v657_v51 = vadd.f32 %v3229_v49, %v656_v48  ;;  %v888_v16 = vmax.f32 %v662_v52, 0.0 }
 0x116   :  { %v970_v57 = vadd.f32 %v969_v23, %v968_v50  ;;  %v2417_v21 = vpop.f32.mrf.mxu0 }
 0x117   :  { %v887_v54 = vmax.f32 %v657_v51, 0.0  ;;  %v672_v25 = vadd.f32 %v2417_v21, %v3229_v49  ;;  %v975_v20 = vsel %vm929_vm2, %v888_v16, 0.0 }
 0x118   :  { %v972_v53 = vadd.f32 %v971_v22, %v970_v57  ;;  %v666_v56 = vpop.f32.mrf.mxu0 }
 0x119   :  { %v973_v24 = vsel %vm929_vm2, %v887_v54, 0.0  ;;  %v667_v18 = vadd.f32 %v3229_v49, %v666_v56  ;;  %v890_v17 = vmax.f32 %v672_v25, 0.0 }
 0x11a   :  { %v974_v58 = vadd.f32 %v973_v24, %v972_v53  ;;  %v2420_v55 = vpop.f32.mrf.mxu0 }
 0x11b   :  { %v889_v48 = vmax.f32 %v667_v18, 0.0  ;;  %v682_v50 = vadd.f32 %v2420_v55, %v3229_v49  ;;  %v979_v22 = vsel %vm929_vm2, %v890_v17, 0.0 }
 0x11c   :  { %v976_v23 = vadd.f32 %v975_v20, %v974_v58  ;;  %v676_v19 = vpop.f32.mrf.mxu0 }
 0x11d   :  { %v977_v52 = vsel %vm929_vm2, %v889_v48, 0.0  ;;  %v677_v51 = vadd.f32 %v3229_v49, %v676_v19  ;;  %v892_v54 = vmax.f32 %v682_v50, 0.0 }
 0x11e   :  { %v978_v57 = vadd.f32 %v977_v52, %v976_v23  ;;  %v2423_v21 = vpop.f32.mrf.mxu0 }
 0x11f   :  { %v891_v56 = vmax.f32 %v677_v51, 0.0  ;;  %v692_v53 = vadd.f32 %v2423_v21, %v3229_v49  ;;  %v983_v20 = vsel %vm929_vm2, %v892_v54, 0.0 }
 0x120   :  { %v980_v24 = vadd.f32 %v979_v22, %v978_v57  ;;  %v686_v16 = vpop.f32.mrf.mxu0 }
 0x121   :  { %v981_v25 = vsel %vm929_vm2, %v891_v56, 0.0  ;;  %v687_v18 = vadd.f32 %v3229_v49, %v686_v16  ;;  %v894_v48 = vmax.f32 %v692_v53, 0.0 }
 0x122   :  { %v982_v58 = vadd.f32 %v981_v25, %v980_v24  ;;  %v2426_v55 = vpop.f32.mrf.mxu0 }
 0x123   :  { %v893_v19 = vmax.f32 %v687_v18, 0.0  ;;  %v702_v23 = vadd.f32 %v2426_v55, %v3229_v49  ;;  %v987_v22 = vsel %vm929_vm2, %v894_v48, 0.0 }
 0x124   :  { %v984_v52 = vadd.f32 %v983_v20, %v982_v58  ;;  %v696_v17 = vpop.f32.mrf.mxu0 }
 0x125   :  { %v985_v50 = vsel %vm929_vm2, %v893_v19, 0.0  ;;  %v697_v51 = vadd.f32 %v3229_v49, %v696_v17  ;;  %v896_v56 = vmax.f32 %v702_v23, 0.0 }
 0x126   :  { %v986_v57 = vadd.f32 %v985_v50, %v984_v52  ;;  %v2429_v21 = vpop.f32.mrf.mxu0 }
 0x127   :  { %v895_v16 = vmax.f32 %v697_v51, 0.0  ;;  %v712_v24 = vadd.f32 %v2429_v21, %v3229_v49  ;;  %v991_v20 = vsel %vm929_vm2, %v896_v56, 0.0 }
 0x128   :  { %v988_v25 = vadd.f32 %v987_v22, %v986_v57  ;;  %v706_v54 = vpop.f32.mrf.mxu0 }
 0x129   :  { %v989_v53 = vsel %vm929_vm2, %v895_v16, 0.0  ;;  %v707_v18 = vadd.f32 %v3229_v49, %v706_v54  ;;  %v898_v19 = vmax.f32 %v712_v24, 0.0 }
 0x12a   :  { %v990_v58 = vadd.f32 %v989_v53, %v988_v25  ;;  %v2432_v55 = vpop.f32.mrf.mxu0 }
 0x12b   :  { %v897_v17 = vmax.f32 %v707_v18, 0.0  ;;  %v722_v52 = vadd.f32 %v2432_v55, %v3229_v49  ;;  %v1000_v21 = vsel %vm929_vm2, %v898_v19, 0.0 }
 0x12c   :  { %v3326_v50 = vadd.f32 %v991_v20, %v990_v58  ;;  %v716_v48 = vpop.f32.mrf.mxu0 }
 0x12d   :  { %v999_v23 = vsel %vm929_vm2, %v897_v17, 0.0  ;;  %v717_v51 = vadd.f32 %v3229_v49, %v716_v48  ;;  %v900_v22 = vmax.f32 %v722_v52, 0.0 }
 0x12e   :  { %v2435_v57 = vpop.f32.mrf.mxu0  ;;  %v1001_v54 = vadd.f32 %v1000_v21, %v999_v23 }
 0x12f   :  { %v899_v16 = vmax.f32 %v717_v51, 0.0  ;;  %v732_v25 = vadd.f32 %v2435_v57, %v3229_v49  ;;  %v1004_v55 = vsel %vm929_vm2, %v900_v22, 0.0 }
 0x130   :  { %v726_v56 = vpop.f32.mrf.mxu0 }
 0x131   :  { %v1002_v24 = vsel %vm929_vm2, %v899_v16, 0.0  ;;  %v727_v53 = vadd.f32 %v3229_v49, %v726_v56  ;;  %v902_v20 = vmax.f32 %v732_v25, 0.0 }
 0x132   :  { %v1003_v18 = vadd.f32 %v1002_v24, %v1001_v54  ;;  %v2438_v58 = vpop.f32.mrf.mxu0 }
 0x133   :  { %v901_v17 = vmax.f32 %v727_v53, 0.0  ;;  %v742_v48 = vadd.f32 %v2438_v58, %v3229_v49  ;;  %v1008_v21 = vsel %vm929_vm2, %v902_v20, 0.0 }
 0x134   :  { %v1005_v59 = vadd.f32 %v1004_v55, %v1003_v18  ;;  %v736_v19 = vpop.f32.mrf.mxu0 }
 0x135   :  { %v1006_v52 = vsel %vm929_vm2, %v901_v17, 0.0  ;;  %v737_v51 = vadd.f32 %v3229_v49, %v736_v19  ;;  %v904_v16 = vmax.f32 %v742_v48, 0.0 }
 0x136   :  { %v1007_v23 = vadd.f32 %v1006_v52, %v1005_v59  ;;  %v2441_v57 = vpop.f32.mrf.mxu0 }
 0x137   :  { %v903_v56 = vmax.f32 %v737_v51, 0.0  ;;  %v752_v54 = vadd.f32 %v2441_v57, %v3229_v49  ;;  %v1012_v55 = vsel %vm929_vm2, %v904_v16, 0.0 }
 0x138   :  { %v1009_v24 = vadd.f32 %v1008_v21, %v1007_v23  ;;  %v746_v22 = vpop.f32.mrf.mxu0 }
 0x139   :  { %v1010_v25 = vsel %vm929_vm2, %v903_v56, 0.0  ;;  %v747_v53 = vadd.f32 %v3229_v49, %v746_v22  ;;  %v906_v17 = vmax.f32 %v752_v54, 0.0 }
 0x13a   :  { %v1011_v18 = vadd.f32 %v1010_v25, %v1009_v24  ;;  %v2444_v58 = vpop.f32.mrf.mxu0 }
 0x13b   :  { %v905_v19 = vmax.f32 %v747_v53, 0.0  ;;  %v762_v59 = vadd.f32 %v2444_v58, %v3229_v49  ;;  %v1016_v21 = vsel %vm929_vm2, %v906_v17, 0.0 }
 0x13c   :  { %v1013_v52 = vadd.f32 %v1012_v55, %v1011_v18  ;;  %v756_v20 = vpop.f32.mrf.mxu0 }
 0x13d   :  { %v1014_v48 = vsel %vm929_vm2, %v905_v19, 0.0  ;;  %v757_v51 = vadd.f32 %v3229_v49, %v756_v20  ;;  %v908_v56 = vmax.f32 %v762_v59, 0.0 }
 0x13e   :  { %v1015_v23 = vadd.f32 %v1014_v48, %v1013_v52  ;;  %v2447_v57 = vpop.f32.mrf.mxu0 }
 0x13f   :  { %v907_v22 = vmax.f32 %v757_v51, 0.0  ;;  %v772_v24 = vadd.f32 %v2447_v57, %v3229_v49  ;;  %v1020_v55 = vsel %vm929_vm2, %v908_v56, 0.0 }
 0x140   :  { %v1017_v25 = vadd.f32 %v1016_v21, %v1015_v23  ;;  %v766_v16 = vpop.f32.mrf.mxu0 }
 0x141   :  { %v1018_v54 = vsel %vm929_vm2, %v907_v22, 0.0  ;;  %v767_v53 = vadd.f32 %v3229_v49, %v766_v16  ;;  %v910_v19 = vmax.f32 %v772_v24, 0.0 }
 0x142   :  { %v1019_v18 = vadd.f32 %v1018_v54, %v1017_v25  ;;  %v2450_v58 = vpop.f32.mrf.mxu0 }
 0x143   :  { %v909_v20 = vmax.f32 %v767_v53, 0.0  ;;  %v782_v52 = vadd.f32 %v2450_v58, %v3229_v49  ;;  %v1024_v21 = vsel %vm929_vm2, %v910_v19, 0.0 }
 0x144   :  { %v1021_v48 = vadd.f32 %v1020_v55, %v1019_v18  ;;  %v776_v17 = vpop.f32.mrf.mxu0 }
 0x145   :  { %v1022_v59 = vsel %vm929_vm2, %v909_v20, 0.0  ;;  %v777_v51 = vadd.f32 %v3229_v49, %v776_v17  ;;  %v912_v22 = vmax.f32 %v782_v52, 0.0 }
 0x146   :  { %v1023_v23 = vadd.f32 %v1022_v59, %v1021_v48  ;;  %v2453_v57 = vpop.f32.mrf.mxu0 }
 0x147   :  { %v911_v16 = vmax.f32 %v777_v51, 0.0  ;;  %v792_v25 = vadd.f32 %v2453_v57, %v3229_v49  ;;  %v1028_v55 = vsel %vm929_vm2, %v912_v22, 0.0 }
 0x148   :  { %v1025_v54 = vadd.f32 %v1024_v21, %v1023_v23  ;;  %v786_v56 = vpop.f32.mrf.mxu0 }
 0x149   :  { %v1026_v24 = vsel %vm929_vm2, %v911_v16, 0.0  ;;  %v787_v53 = vadd.f32 %v3229_v49, %v786_v56  ;;  %v914_v20 = vmax.f32 %v792_v25, 0.0 }
 0x14a   :  { %v1027_v18 = vadd.f32 %v1026_v24, %v1025_v54  ;;  %v2456_v58 = vpop.f32.mrf.mxu0 }
 0x14b   :  { %v913_v17 = vmax.f32 %v787_v53, 0.0  ;;  %v802_v48 = vadd.f32 %v2456_v58, %v3229_v49  ;;  %v1032_v21 = vsel %vm929_vm2, %v914_v20, 0.0 }
 0x14c   :  { %v1029_v59 = vadd.f32 %v1028_v55, %v1027_v18  ;;  %v796_v19 = vpop.f32.mrf.mxu0 }
 0x14d   :  { %v1030_v52 = vsel %vm929_vm2, %v913_v17, 0.0  ;;  %v797_v51 = vadd.f32 %v3229_v49, %v796_v19  ;;  %v916_v16 = vmax.f32 %v802_v48, 0.0 }
 0x14e   :  { %v1031_v23 = vadd.f32 %v1030_v52, %v1029_v59  ;;  %v2459_v57 = vpop.f32.mrf.mxu0 }
 0x14f   :  { %v915_v56 = vmax.f32 %v797_v51, 0.0  ;;  %v812_v54 = vadd.f32 %v2459_v57, %v3229_v49  ;;  %v1036_v55 = vsel %vm929_vm2, %v916_v16, 0.0 }
 0x150   :  { %v1033_v24 = vadd.f32 %v1032_v21, %v1031_v23  ;;  %v806_v22 = vpop.f32.mrf.mxu0 }
 0x151   :  { %v1034_v25 = vsel %vm929_vm2, %v915_v56, 0.0  ;;  %v807_v53 = vadd.f32 %v3229_v49, %v806_v22  ;;  %v918_v17 = vmax.f32 %v812_v54, 0.0 }
 0x152   :  { %v1035_v18 = vadd.f32 %v1034_v25, %v1033_v24  ;;  %v2462_v58 = vpop.f32.mrf.mxu0 }
 0x153   :  { %v917_v19 = vmax.f32 %v807_v53, 0.0  ;;  %v822_v59 = vadd.f32 %v2462_v58, %v3229_v49  ;;  %v1040_v21 = vsel %vm929_vm2, %v918_v17, 0.0 }
 0x154   :  { %v1037_v52 = vadd.f32 %v1036_v55, %v1035_v18  ;;  %v816_v20 = vpop.f32.mrf.mxu0 }
 0x155   :  { %v1038_v48 = vsel %vm929_vm2, %v917_v19, 0.0  ;;  %v817_v51 = vadd.f32 %v3229_v49, %v816_v20  ;;  %v920_v56 = vmax.f32 %v822_v59, 0.0 }
 0x156   :  { %v1039_v23 = vadd.f32 %v1038_v48, %v1037_v52  ;;  %v2465_v57 = vpop.f32.mrf.mxu0 }
 0x157   :  { %v919_v22 = vmax.f32 %v817_v51, 0.0  ;;  %v832_v24 = vadd.f32 %v2465_v57, %v3229_v49  ;;  %v1044_v55 = vsel %vm929_vm2, %v920_v56, 0.0 }
 0x158   :  { %v1041_v25 = vadd.f32 %v1040_v21, %v1039_v23  ;;  %v826_v16 = vpop.f32.mrf.mxu0  ;;  %v993_v23 = vrot.slane %v3326_v50, 4 }
 0x159   :  { %v1042_v54 = vsel %vm929_vm2, %v919_v22, 0.0  ;;  %v827_v53 = vadd.f32 %v3229_v49, %v826_v16  ;;  %v922_v19 = vmax.f32 %v832_v24, 0.0 }
 0x15a   :  { %v1043_v18 = vadd.f32 %v1042_v54, %v1041_v25  ;;  %v2468_v58 = vpop.f32.mrf.mxu0 }
 0x15b   :  { %v921_v20 = vmax.f32 %v827_v53, 0.0  ;;  %v842_v52 = vadd.f32 %v2468_v58, %v3229_v49  ;;  %v1048_v22 = vsel %vm929_vm2, %v922_v19, 0.0  ;;  %v994_v58 = vadd.f32 %v993_v23, %v3326_v50 }
 0x15c   :  { %v1045_v48 = vadd.f32 %v1044_v55, %v1043_v18  ;;  %v836_v17 = vpop.f32.mrf.mxu0 }
 0x15d   :  { %v1046_v59 = vsel %vm929_vm2, %v921_v20, 0.0  ;;  %v837_v51 = vadd.f32 %v3229_v49, %v836_v17  ;;  %v924_v25 = vmax.f32 %v842_v52, 0.0 }
 0x15e   :  { %v1047_v57 = vadd.f32 %v1046_v59, %v1045_v48  ;;  %v2471_v21 = vpop.f32.mrf.mxu0 }
 0x15f   :  { %v923_v16 = vmax.f32 %v837_v51, 0.0  ;;  %v852_v56 = vadd.f32 %v2471_v21, %v3229_v49  ;;  %v1052_v17 = vsel %vm929_vm2, %v924_v25, 0.0 }
 0x160   :  { %v1049_v24 = vadd.f32 %v1048_v22, %v1047_v57  ;;  %v846_v54 = vpop.f32.mrf.mxu0  ;;  %v995_v22 = vrot.slane %v994_v58, 2 }
 0x161   :  { %v1050_v53 = vsel %vm929_vm2, %v923_v16, 0.0  ;;  %v847_v18 = vadd.f32 %v3229_v49, %v846_v54  ;;  %v926_v48 = vmax.f32 %v852_v56, 0.0 }
 0x162   :  { %v1051_v55 = vadd.f32 %v1050_v53, %v1049_v24  ;;  %v2474_v20 = vpop.f32.mrf.mxu0  ;;  %v996_v25 = vadd.f32 %v995_v22, %v994_v58 }
 0x163   :  { %v925_v59 = vmax.f32 %v847_v18, 0.0  ;;  %v862_v19 = vadd.f32 %v2474_v20, %v3229_v49  ;;  %v1056_v54 = vsel %vm929_vm2, %v926_v48, 0.0 }
 0x164   :  { %v1053_v52 = vadd.f32 %v1052_v17, %v1051_v55  ;;  %v856_v51 = vpop.f32.mrf.mxu0  ;;  %v997_v55 = vrot.slane %v996_v25, 1 }
 0x165   :  { %v1054_v21 = vsel %vm929_vm2, %v925_v59, 0.0  ;;  %v857_v57 = vadd.f32 %v3229_v49, %v856_v51  ;;  %v928_v26 = vmax.f32 %v862_v19, 0.0 }
 0x166   :  { %v1055_v16 = vadd.f32 %v1054_v21, %v1053_v52  ;;  %v998_v59 = vadd.f32 %v997_v55, %v996_v25  ;;  %v2517_v25 = vld [vmem:[%s3659_s3 + $0x28] ss:$16 sps:$4 sm:$0xff]  }
 0x167   :  { %v927_v50 = vmax.f32 %v857_v57, 0.0  ;;  %v1060_v53 = vsel %vm929_vm2, %v928_v26, 0.0  ;;  %v2511_v26 = vld [vmem:[%s3659_s3 + $0x68] ss:$16 sps:$4 sm:$0xff]  }
 0x168   :  { %v1057_v23 = vadd.f32 %v1056_v54, %v1055_v16  ;;  %v1068_v51 = vmul.f32 0.00390625, %v998_v59 }
 0x169   :  { %v1058_v24 = vsel %vm929_vm2, %v927_v50, 0.0  ;;  %v2516_v50 = vld [vmem:[%s3659_s3 + $0x4c] ss:$16 sps:$4 sm:$0xff]  }
 0x16a   :  { %v1059_v56 = vadd.f32 %v1058_v24, %v1057_v23  ;;  %v1070_v19 = vpack.c.bf16 %v1068_v51, %v1068_v51  ;;  %v3717_v23 = vmov 0   ;;  %v2519_v24 = vld [vmem:[%s3659_s3 + $0x2c] ss:$16 sps:$4 sm:$0xff]  }
 0x16c   :  { %v1061_v18 = vadd.f32 %v1060_v53, %v1059_v56  ;;  %v1112_v16 = vunpack.c.l.b16 %v1070_v19  ;;  %v2522_v56 = vld [vmem:[%s3659_s3 + $0xc] ss:$16 sps:$4 sm:$0xff]   ;;  %v2520_v53 = vld [vmem:[%s3659_s3 + $0x8] ss:$16 sps:$4 sm:$0xff]  }
 0x16e   :  { %v1062_v20 = vrot.slane %v1061_v18, 4 }
 0x170   :  { %v1063_v17 = vadd.f32 %v1062_v20, %v1061_v18  ;;  %v1090_v18 = vlaneseq }
 0x172   :  { %v1064_v27 = vrot.slane %v1063_v17, 2  ;;  %v3415_v55 = vshrl.u32 %v1090_v18, 7 }
 0x174   :  { %v1065_v49 = vadd.f32 %v1064_v27, %v1063_v17  ;;  %v2514_v27 = vld [vmem:[%s3659_s3 + $0x48] ss:$16 sps:$4 sm:$0xff]   ;;  %v1092_v20 = vsub.s32 0, %v3415_v55  ;;  %v1088_v17 = vld [vmem:[%s3660_s4] sm:$0xf]  ;;  %v1096_v59 = vsub.s32 1, %v3415_v55 }
 0x176   :  { %v1066_v52 = vrot.slane %v1065_v49, 1  ;;  %v1097_v51 = vrot.slane %v1088_v17, %v1096_v59 }
 0x178   :  { %v1067_v21 = vadd.f32 %v1066_v52, %v1065_v49  ;;  %v1093_v49 = vrot.slane %v1088_v17, %v1092_v20 }
 0x17a   :  { %v1069_v48 = vmul.f32 0.00390625, %v1067_v21 }
 0x17c   :  { %v1071_v57 = vpack.c.bf16 %v1069_v48, %v1069_v48 }
 0x17e   :  { %v1113_v54 = vunpack.c.l.b16 %v1071_v57 }
 0x180   :  { %v1115_v58 = vsel %vm1114_vm3, %v1113_v54, %v1112_v16 }
 0x181   :  { %v1116_v22 = vpack.c.b16 %v1115_v58, %v1115_v58  ;;  %v1100_v58 = vsub.s32 2, %v3415_v55 }
 0x183   :  { %2176 = vmatmul.mubr.msk.bf16.vlgmr.msra.gmra.mxu1 %vm929_vm2, %v1116_v22 }
 0x184   :  { %1250 = vmatpush1.bf16.msra.mxu1 %v2511_v26  ;;  %1273 = vmatprep.mubr.bf16.mxu1 %v3717_v23 }
 0x185   :  { %1251 = vmatprep.subr.bf16.mxu1 %v2516_v50  ;;  %v1101_v50 = vrot.slane %v1088_v17, %v1100_v58 }
 0x188   :  { %1252 = vmatpush1.bf16.msra.mxu1 %v2514_v27 }
 0x189   :  { %1253 = vmatprep.subr.bf16.mxu1 %v2519_v24 }
 0x18c   :  { %1254 = vmatpush1.bf16.msra.mxu1 %v2517_v25 }
 0x18d   :  { %1255 = vmatprep.subr.bf16.mxu1 %v2522_v56 }
 0x190   :  { %1256 = vmatpush1.bf16.msra.mxu1 %v2520_v53 }
 0x193   :  { %2177 = vmatmul.mubr.msk.bf16.vlgmr.msra.gmra.mxu1 %vm929_vm2, %v1116_v22  ;;  %v1104_v22 = vsub.s32 3, %v3415_v55 }
 0x195   :  { %v1105_v27 = vrot.slane %v1088_v17, %v1104_v22  ;;  %v2224_v17 = vcombine.low %v2868_v46, %v2873_v47 }
 0x243   :  { %v1234_v52 = vpop.f32.mrf.mxu1 }
 0x244   :  { %v3426_v21 = vadd.f32 %v1234_v52, %v1093_v49 }
 0x245   :  { %v1236_v48 = vpop.f32.mrf.mxu1 }
 0x246   :  { %v1282_v19 = vmax.f32 %v3426_v21, 0.0  ;;  %v1237_v57 = vadd.f32 %v1236_v48, %v1097_v51  ;;  %v2193_v51 = vcombine.high %v2708_v14, %v2713_v15  ;;  %v2225_v48 = vcombine.high %v2868_v46, %v2873_v47 }
 0x247   :  { %v1238_v16 = vpop.f32.mrf.mxu1 }
 0x248   :  { %v1283_v54 = vmax.f32 %v1237_v57, 0.0  ;;  %v2192_v57 = vcombine.low %v2708_v14, %v2713_v15 }
 0x249   :  { %v1239_v26 = vpop.f32.mrf.mxu1 }
 0x253   :  { %v1275_v23 = vpop.f32.mrf.mxu1 }
 0x254   :  { %v3431_v24 = vadd.f32 %v1275_v23, %v1101_v50 }
 0x255   :  { %v1277_v25 = vpop.f32.mrf.mxu1 }
 0x256   :  { %v1284_v56 = vmax.f32 %v3431_v24, 0.0  ;;  %v1278_v53 = vadd.f32 %v1277_v25, %v1105_v27 }
 0x257   :  { %v1279_v18 = vpop.f32.mrf.mxu1 }
 0x258   :  { %v1285_v49 = vmax.f32 %v1278_v53, 0.0 }
 0x259   :  { %v1280_v52 = vpop.f32.mrf.mxu1 }
 0x25a   :  { %2567 = dma.done.wait [#allocation3], 8192 }
 0x25b   :  { %2568 = vsyncadd [#allocation3], 4294959104  ;;  %v2191_v16 = vcombine.high %v2698_v12, %v2703_v13  ;;  %v2223_v26 = vcombine.high %v2858_v44, %v2863_v45  ;;  %1690 = vmatprep.subr.bf16.mxu1 %v2193_v51  ;;  %1731 = vmatprep.subr.bf16.mxu0 %v2225_v48  ;;  %v2190_v58 = vcombine.low %v2698_v12, %v2703_v13  ;;  %v3721_v27 = vld [vmem:[#allocation31_spill] sm:$0xff]  ;;  %v3725_v18 = vld [vmem:[#allocation29_spill] sm:$0xff]  ;;  %vm2573_vm4 = vmmov 0  }
 0x25c   :  { %1691 = vmatpush1.bf16.msra.mxu1 %v2192_v57  ;;  %1732 = vmatpush1.bf16.msra.mxu0 %v2224_v17  ;;  %v2222_v14 = vcombine.low %v2858_v44, %v2863_v45  ;;  %v2189_v15 = vcombine.high %v2688_v10, %v2693_v11  ;;  %v2221_v46 = vcombine.high %v2848_v42, %v2853_v43  ;;  %v3726_v48 = vld [vmem:[#allocation16_spill] sm:$0xff]  ;;  %v3727_v57 = vld [vmem:[#allocation15_spill] sm:$0xff]  ;;  %v2528_v24 = vld [vmem:[%s3663_s7 + $0x28] sm:$0xff]   ;;  %vm2064_vm5 = vcmask 58368  }
 0x25d   :  { %1692 = vmatprep.subr.bf16.mxu1 %v2191_v16  ;;  %1733 = vmatprep.subr.bf16.mxu0 %v2223_v26  ;;  %v2188_v47 = vcombine.low %v2688_v10, %v2693_v11  ;;  %v2220_v22 = vcombine.low %v2848_v42, %v2853_v43  ;;  %v2187_v12 = vcombine.high %v2678_v8, %v2683_v9  ;;  %v3728_v16 = vld [vmem:[#allocation28_spill] sm:$0xff]  ;;  %v3729_v26 = vld [vmem:[#allocation27_spill] sm:$0xff] }
 0x25e   :  { %v2219_v13 = vcombine.high %v2838_v40, %v2843_v41  ;;  %v2186_v44 = vcombine.low %v2678_v8, %v2683_v9  ;;  %v2218_v45 = vcombine.low %v2838_v40, %v2843_v41  ;;  %v2185_v10 = vcombine.high %v2668_v6, %v2673_v7  ;;  %v2526_v21 = vld [vmem:[%s3663_s7 + $0x30] sm:$0xff]   ;;  %v2539_v55 = vld [vmem:[%s3665_s9 + $0x38] sm:$0xff]  }
 0x25f   :  { %v2217_v11 = vcombine.high %v2828_v38, %v2833_v39  ;;  %v2184_v42 = vcombine.low %v2668_v6, %v2673_v7  ;;  %v2216_v43 = vcombine.low %v2828_v38, %v2833_v39  ;;  %v2183_v8 = vcombine.high %v2658_v4, %v2663_v5 }
 0x260   :  { %1693 = vmatpush1.bf16.msra.mxu1 %v2190_v58  ;;  %1734 = vmatpush1.bf16.msra.mxu0 %v2222_v14  ;;  %v2215_v9 = vcombine.high %v2818_v36, %v2823_v37  ;;  %v1291_v40 = vpack.c.bf16 %v1283_v54, %v1283_v54  ;;  %v1293_v41 = vpack.c.bf16 %v1285_v49, %v1285_v49 }
 0x261   :  { %1694 = vmatprep.subr.bf16.mxu1 %v2189_v15  ;;  %1735 = vmatprep.subr.bf16.mxu0 %v2221_v46  ;;  %v2182_v50 = vcombine.low %v2658_v4, %v2663_v5  ;;  %v2214_v6 = vcombine.low %v2818_v36, %v2823_v37  ;;  %v2181_v7 = vcombine.high %v2648_v2, %v2653_v3  ;;  %v3730_v46 = vld [vmem:[#allocation14_spill] sm:$0xff] }
 0x262   :  { %v2213_v38 = vcombine.high %v2808_v34, %v2813_v35  ;;  %1722 = vmatprep.mubr.bf16.mxu1 %v1291_v40  ;;  %1763 = vmatprep.mubr.bf16.mxu0 %v1293_v41  ;;  %v2180_v39 = vcombine.low %v2648_v2, %v2653_v3  ;;  %v2212_v4 = vcombine.low %v2808_v34, %v2813_v35 }
 0x263   :  { %v2179_v5 = vcombine.high %v2638_v0, %v2643_v1  ;;  %v2211_v36 = vcombine.high %v2798_v32, %v2803_v33  ;;  %v2178_v37 = vcombine.low %v2638_v0, %v2643_v1  ;;  %v2210_v54 = vcombine.low %v2798_v32, %v2803_v33 }
 0x264   :  { %1695 = vmatpush1.bf16.msra.mxu1 %v2188_v47  ;;  %1736 = vmatpush1.bf16.msra.mxu0 %v2220_v22  ;;  %v2209_v2 = vcombine.high %v2788_v30, %v2793_v31  ;;  %v2241_v3 = vcombine.high %v2948_v62, %v2953_v63  ;;  %v2208_v34 = vcombine.low %v2788_v30, %v2793_v31  ;;  %v3718_v30 = vld [vmem:[#allocation20_spill] sm:$0xff]  ;;  %v3719_v31 = vld [vmem:[#allocation19_spill] sm:$0xff]  ;;  %v3731_v47 = vld [vmem:[#allocation13_spill] sm:$0xff] }
 0x265   :  { %1696 = vmatprep.subr.bf16.mxu1 %v2187_v12  ;;  %1737 = vmatprep.subr.bf16.mxu0 %v2219_v13  ;;  %v2240_v35 = vcombine.low %v2948_v62, %v2953_v63  ;;  %v2207_v0 = vcombine.high %v2778_v28, %v2783_v29  ;;  %v2239_v1 = vcombine.high %v2938_v60, %v2943_v61  ;;  %v3720_v63 = vld [vmem:[#allocation32_spill] sm:$0xff]  ;;  %v3732_v12 = vld [vmem:[#allocation26_spill] sm:$0xff]  ;;  %v3733_v13 = vld [vmem:[#allocation25_spill] sm:$0xff] }
 0x266   :  { %v2206_v32 = vcombine.low %v2778_v28, %v2783_v29  ;;  %v2238_v33 = vcombine.low %v2938_v60, %v2943_v61  ;;  %v2205_v62 = vcombine.high %v3719_v31, %v3718_v30  ;;  %v2237_v23 = vcombine.high %v3721_v27, %v3720_v63  ;;  %v3722_v28 = vld [vmem:[#allocation18_spill] sm:$0xff]  ;;  %v3723_v29 = vld [vmem:[#allocation17_spill] sm:$0xff] }
 0x267   :  { %v2204_v25 = vcombine.low %v3719_v31, %v3718_v30  ;;  %v2236_v53 = vcombine.low %v3721_v27, %v3720_v63  ;;  %v2203_v60 = vcombine.high %v3723_v29, %v3722_v28  ;;  %v3724_v61 = vld [vmem:[#allocation30_spill] sm:$0xff]  ;;  %v2202_v52 = vcombine.low %v3723_v29, %v3722_v28  ;;  %v2537_v63 = vld [vmem:[%s3663_s7 + $0x40] sm:$0xff]  }
 0x268   :  { %1697 = vmatpush1.bf16.msra.mxu1 %v2186_v44  ;;  %1738 = vmatpush1.bf16.msra.mxu0 %v2218_v45  ;;  %v2235_v49 = vcombine.high %v3725_v18, %v3724_v61  ;;  %v2234_v51 = vcombine.low %v3725_v18, %v3724_v61  ;;  %v2201_v17 = vcombine.high %v3727_v57, %v3726_v48  ;;  %v2534_v30 = vld [vmem:[%s3663_s7 + $0x10] sm:$0xff]   ;;  %v2535_v31 = vld [vmem:[%s3663_s7 + $0x48] sm:$0xff]   ;;  %v2538_v27 = vld [vmem:[%s3663_s7] sm:$0xff]  }
 0x269   :  { %1698 = vmatprep.subr.bf16.mxu1 %v2185_v10  ;;  %1739 = vmatprep.subr.bf16.mxu0 %v2217_v11  ;;  %v2233_v58 = vcombine.high %v3729_v26, %v3728_v16  ;;  %v2200_v14 = vcombine.low %v3727_v57, %v3726_v48  ;;  %v2232_v15 = vcombine.low %v3729_v26, %v3728_v16  ;;  %v3734_v11 = vld [vmem:[#allocation12_spill] sm:$0xff] }
 0x26a   :  { %v2199_v22 = vcombine.high %v3731_v47, %v3730_v46  ;;  %v2231_v44 = vcombine.high %v3733_v13, %v3732_v12  ;;  %v2198_v45 = vcombine.low %v3731_v47, %v3730_v46  ;;  %v2230_v10 = vcombine.low %v3733_v13, %v3732_v12  ;;  %v2541_v46 = vld [vmem:[%s3665_s9 + $0x28] sm:$0xff]   ;;  %v2542_v47 = vld [vmem:[%s3665_s9 + $0x20] sm:$0xff]   ;;  %v2544_v12 = vld [vmem:[%s3665_s9 + $0x10] sm:$0xff]  }
 0x26b   :  { %v2545_v13 = vld [vmem:[%s3665_s9 + $0x8] sm:$0xff]  }
 0x26c   :  { %1699 = vmatpush1.bf16.msra.mxu1 %v2184_v42  ;;  %1740 = vmatpush1.bf16.msra.mxu0 %v2216_v43  ;;  %v3735_v42 = vld [vmem:[#allocation11_spill] sm:$0xff] }
 0x26d   :  { %1700 = vmatprep.subr.bf16.mxu1 %v2183_v8  ;;  %1741 = vmatprep.subr.bf16.mxu0 %v2215_v9  ;;  %v2197_v43 = vcombine.high %v3735_v42, %v3734_v11  ;;  %v3736_v8 = vld [vmem:[#allocation24_spill] sm:$0xff]  ;;  %v3737_v9 = vld [vmem:[#allocation23_spill] sm:$0xff]  ;;  %v2196_v41 = vcombine.low %v3735_v42, %v3734_v11 }
 0x26e   :  { %v2229_v40 = vcombine.high %v3737_v9, %v3736_v8 }
 0x270   :  { %1701 = vmatpush1.bf16.msra.mxu1 %v2182_v50  ;;  %1742 = vmatpush1.bf16.msra.mxu0 %v2214_v6  ;;  %v2228_v50 = vcombine.low %v3737_v9, %v3736_v8  ;;  %v3738_v6 = vld [vmem:[#allocation10_spill] sm:$0xff] }
 0x271   :  { %1702 = vmatprep.subr.bf16.mxu1 %v2181_v7  ;;  %1743 = vmatprep.subr.bf16.mxu0 %v2213_v38  ;;  %v3739_v7 = vld [vmem:[#allocation9_spill] sm:$0xff] }
 0x272   :  { %v2195_v38 = vcombine.high %v3739_v7, %v3738_v6 }
 0x274   :  { %1703 = vmatpush1.bf16.msra.mxu1 %v2180_v39  ;;  %1744 = vmatpush1.bf16.msra.mxu0 %v2212_v4  ;;  %v3740_v39 = vld [vmem:[#allocation22_spill] sm:$0xff]  ;;  %v3741_v4 = vld [vmem:[#allocation21_spill] sm:$0xff] }
 0x275   :  { %1704 = vmatprep.subr.bf16.mxu1 %v2179_v5  ;;  %1745 = vmatprep.subr.bf16.mxu0 %v2211_v36  ;;  %v2227_v5 = vcombine.high %v3741_v4, %v3740_v39  ;;  %v2194_v36 = vcombine.low %v3739_v7, %v3738_v6 }
 0x278   :  { %1705 = vmatpush1.bf16.msra.mxu1 %v2178_v37  ;;  %1746 = vmatpush1.bf16.msra.mxu0 %v2210_v54  ;;  %v2226_v37 = vcombine.low %v3741_v4, %v3740_v39  ;;  %v2523_v54 = vld [vmem:[%s3663_s7 + $0x78] sm:$0xff]  }
 0x279   :  { %1706 = vmatprep.subr.bf16.mxu1 %v2209_v2  ;;  %1747 = vmatprep.subr.bf16.mxu0 %v2241_v3  ;;  %v1290_v2 = vpack.c.bf16 %v1282_v19, %v1282_v19  ;;  %v1292_v3 = vpack.c.bf16 %v1284_v56, %v1284_v56  ;;  %v2527_v19 = vld [vmem:[%s3663_s7 + $0x68] sm:$0xff]   ;;  %v2529_v56 = vld [vmem:[%s3663_s7 + $0x60] sm:$0xff]  }
 0x27c   :  { %1707 = vmatpush2.bf16.msra.mxu1 %v2208_v34  ;;  %1748 = vmatpush2.bf16.msra.mxu0 %v2240_v35  ;;  %v2524_v34 = vld [vmem:[%s3663_s7 + $0x38] sm:$0xff]   ;;  %v2525_v35 = vld [vmem:[%s3663_s7 + $0x70] sm:$0xff]  }
 0x27d   :  { %1708 = vmatprep.subr.bf16.mxu1 %v2207_v0  ;;  %1749 = vmatprep.subr.bf16.mxu0 %v2239_v1  ;;  %v2530_v0 = vld [vmem:[%s3663_s7 + $0x20] sm:$0xff]   ;;  %v2531_v1 = vld [vmem:[%s3663_s7 + $0x58] sm:$0xff]  }
 0x280   :  { %1709 = vmatpush2.bf16.msra.mxu1 %v2206_v32  ;;  %1750 = vmatpush2.bf16.msra.mxu0 %v2238_v33  ;;  %v2532_v32 = vld [vmem:[%s3663_s7 + $0x18] sm:$0xff]   ;;  %v2533_v33 = vld [vmem:[%s3663_s7 + $0x50] sm:$0xff]  }
 0x281   :  { %1710 = vmatprep.subr.bf16.mxu1 %v2205_v62  ;;  %1751 = vmatprep.subr.bf16.mxu0 %v2237_v23  ;;  %v2536_v62 = vld [vmem:[%s3663_s7 + $0x8] sm:$0xff]   ;;  %v2572_v23 = vmov 0.0  }
 0x284   :  { %1711 = vmatpush2.bf16.msra.mxu1 %v2204_v25  ;;  %1752 = vmatpush2.bf16.msra.mxu0 %v2236_v53  ;;  %v1358_v25 = vld [vmem:[%s3662_s6] sm:$0x3] }
 0x285   :  { %1712 = vmatprep.subr.bf16.mxu1 %v2203_v60  ;;  %1753 = vmatprep.subr.bf16.mxu0 %v2235_v49  ;;  %v1363_v53 = vrot.slane %v1358_v25, %v1092_v20  ;;  %v1367_v28 = vrot.slane %v1358_v25, %v1096_v59  ;;  %v2540_v59 = vld [vmem:[%s3665_s9 + $0x30] sm:$0xff]  }
 0x288   :  { %1713 = vmatpush2.bf16.msra.mxu1 %v2202_v52  ;;  %1754 = vmatpush2.bf16.msra.mxu0 %v2234_v51 }
 0x289   :  { %1714 = vmatprep.subr.bf16.mxu1 %v2201_v17  ;;  %1755 = vmatprep.subr.bf16.mxu0 %v2233_v58 }
 0x28c   :  { %1715 = vmatpush2.bf16.msra.mxu1 %v2200_v14  ;;  %1756 = vmatpush2.bf16.msra.mxu0 %v2232_v15 }
 0x28d   :  { %1716 = vmatprep.subr.bf16.mxu1 %v2199_v22  ;;  %1757 = vmatprep.subr.bf16.mxu0 %v2231_v44  ;;  %v2543_v22 = vld [vmem:[%s3665_s9 + $0x18] sm:$0xff]   ;;  %v2546_v44 = vld [vmem:[%s3665_s9] sm:$0xff]   ;;  %s2574_s9 = smov [#allocation4]  }
 0x28e   :  { %s2072_s14 = sshll.u32 %s2574_s9, 4  ;;  %s2073_s14 = int_to_ptr.vmem [resolvable:$true] %s2072_s14 }
 0x28f   :  { %p2552_p1 = scmp.lt.s32.totalorder %s2073_s14, %s2073_s14 }
 0x290   :  { %1717 = vmatpush2.bf16.msra.mxu1 %v2198_v45  ;;  %1758 = vmatpush2.bf16.msra.mxu0 %v2230_v10  ;;  %v2242_v10 = vld [vmem:[%s3664_s8] ss:$0 sm:$0xff]  ;;  %s2547_s8 = scalar_lea.vmem %s2073_s14, 32 }
 0x291   :  { %1718 = vmatprep.subr.bf16.mxu1 %v2197_v43  ;;  %1759 = vmatprep.subr.bf16.mxu0 %v2229_v40  ;;  %p2548_p0 = scmp.ne.s32.totalorder %s2073_s14, %s2547_s8  ;;  %p2553_p2 = scmp.lt.s32.totalorder %s2547_s8, %s2547_s8 }
 0x293   :  { %p2554_p3 = por %p2553_p2, %p2552_p1 }
 0x294   :  { %1719 = vmatpush2.bf16.msra.mxu1 %v2196_v41  ;;  %1760 = vmatpush2.bf16.msra.mxu0 %v2228_v50  ;;  %v2259_v50 = vld [vmem:[%s3666_s10] ss:$0 sm:$0xff] }
 0x295   :  { %1720 = vmatprep.subr.bf16.mxu1 %v2195_v38  ;;  %1761 = vmatprep.subr.bf16.mxu0 %v2227_v5  ;;  %p2555_p4 = pnand %p2554_p3, %p2548_p0 }
 0x298   :  { %1721 = vmatpush2.bf16.msra.mxu1 %v2194_v36  ;;  %1762 = vmatpush2.bf16.msra.mxu0 %v2226_v37 }
 0x299   :  { %2338 = vmatprep.subr.bf16.mxu1 %v2523_v54 }
 0x29b   :  { %1723 = vmatmul.mubr.bf16.vlgmr.msra.gmra.mxu1 %v1290_v2  ;;  %1764 = vmatmul.mubr.bf16.vlgmr.msra.gmra.mxu0 %v1292_v3 }
 0x29c   :  { %2339 = vmatpush3.bf16.msra.mxu1 %v2524_v34 }
 0x29d   :  { %2340 = vmatprep.subr.bf16.mxu1 %v2525_v35 }
 0x2a0   :  { %2341 = vmatpush3.bf16.msra.mxu1 %v2526_v21 }
 0x2a1   :  { %2342 = vmatprep.subr.bf16.mxu1 %v2527_v19 }
 0x2a4   :  { %2343 = vmatpush3.bf16.msra.mxu1 %v2528_v24 }
 0x2a5   :  { %2344 = vmatprep.subr.bf16.mxu1 %v2529_v56 }
 0x2a8   :  { %2345 = vmatpush3.bf16.msra.mxu1 %v2530_v0 }
 0x2a9   :  { %2346 = vmatprep.subr.bf16.mxu1 %v2531_v1 }
 0x2ac   :  { %2347 = vmatpush3.bf16.msra.mxu1 %v2532_v32 }
 0x2ad   :  { %2348 = vmatprep.subr.bf16.mxu1 %v2533_v33 }
 0x2b0   :  { %2349 = vmatpush3.bf16.msra.mxu1 %v2534_v30 }
 0x2b1   :  { %2350 = vmatprep.subr.bf16.mxu1 %v2535_v31 }
 0x2b4   :  { %2351 = vmatpush3.bf16.msra.mxu1 %v2536_v62 }
 0x2b5   :  { %2352 = vmatprep.subr.bf16.mxu1 %v2537_v63 }
 0x2b8   :  { %2353 = vmatpush3.bf16.msra.mxu1 %v2538_v27 }
 0x2b9   :  { %2475 = vmatprep.subr.bf16.mxu1 %v2572_v23 }
 0x35b   :  { %v1724_v29 = vpop.f32.mrf.mxu1  ;;  %v1765_v60 = vpop.f32.mrf.mxu0 }
 0x35c   :  { %v1725_v61 = vadd.f32 %v1724_v29, %v1363_v53 }
 0x35d   :  { %v1726_v18 = vpop.f32.mrf.mxu1  ;;  %v1767_v49 = vpop.f32.mrf.mxu0 }
 0x35e   :  { %v1766_v52 = vadd.f32 %v1765_v60, %v1725_v61  ;;  %v1727_v51 = vadd.f32 %v1726_v18, %v1367_v28 }
 0x35f   :  { %v1728_v48 = vpop.f32.mrf.mxu1  ;;  %v1769_v57 = vpop.f32.mrf.mxu0 }
 0x360   :  { %v1768_v17 = vadd.f32 %v1767_v49, %v1727_v51  ;;  %v1772_v16 = vmax.f32 %v1766_v52, 0.0 }
 0x361   :  { %v1729_v26 = vpop.f32.mrf.mxu1  ;;  %v1770_v58 = vpop.f32.mrf.mxu0 }
 0x362   :  { %v1773_v14 = vmax.f32 %v1768_v17, 0.0  ;;  %v1774_v20 = vpack.c.bf16 %v1772_v16, %v1772_v16 }
 0x364   :  { %v1775_v15 = vpack.c.bf16 %v1773_v14, %v1773_v14 }
 0x366   :  { %1943 = vmatprep.mubr.bf16.mxu1 %v1775_v15 }
 0x367   :  { %1944 = vmatmul.mubr.bf16.vlgmr.msra.gmra.mxu1 %v1774_v20 }
 0x368   :  { %2476 = vmatpush3.bf16.msra.mxu1 %v2539_v55  ;;  %2491 = vmatprep.mubr.msk.bf16.mxu1 %vm2573_vm4, %v2572_v23 }
 0x369   :  { %2477 = vmatprep.subr.bf16.mxu1 %v2572_v23 }
 0x36c   :  { %2478 = vmatpush3.bf16.msra.mxu1 %v2540_v59 }
 0x36d   :  { %2479 = vmatprep.subr.bf16.mxu1 %v2572_v23 }
 0x370   :  { %2480 = vmatpush3.bf16.msra.mxu1 %v2541_v46 }
 0x371   :  { %2481 = vmatprep.subr.bf16.mxu1 %v2572_v23 }
 0x374   :  { %2482 = vmatpush3.bf16.msra.mxu1 %v2542_v47 }
 0x375   :  { %2483 = vmatprep.subr.bf16.mxu1 %v2572_v23 }
 0x378   :  { %2484 = vmatpush3.bf16.msra.mxu1 %v2543_v22 }
 0x379   :  { %2485 = vmatprep.subr.bf16.mxu1 %v2572_v23 }
 0x37c   :  { %2486 = vmatpush3.bf16.msra.mxu1 %v2544_v12 }
 0x37d   :  { %2487 = vmatprep.subr.bf16.mxu1 %v2572_v23 }
 0x380   :  { %2488 = vmatpush3.bf16.msra.mxu1 %v2545_v13 }
 0x381   :  { %2489 = vmatprep.subr.bf16.mxu1 %v2572_v23 }
 0x384   :  { %2490 = vmatpush3.bf16.msra.mxu1 %v2546_v44 }
 0x427   :  { %v2354_v45 = vpop.f32.mrf.mxu1 }
 0x429   :  { %v2355_v11 = vpop.f32.mrf.mxu1 }
 0x42a   :  { %v2356_v42 = vadd.f32 %v2355_v11, %v2354_v45 }
 0x42b   :  { %v2357_v43 = vpop.f32.mrf.mxu1 }
 0x42c   :  { %v1946_v8 = vadd.f32 %v2356_v42, %v2242_v10 }
 0x42d   :  { %v2358_v9 = vpop.f32.mrf.mxu1 }
 0x42e   :  { %v1951_v40 = vmax.f32 %v1946_v8, 0.0 }
 0x430   :  { %v1952_v41 = vpack.c.bf16 %v1951_v40, %v1951_v40 }
 0x432   :  { %2492 = vmatmul.mubr.bf16.vlgmr.msra.gmra.mxu1 %v1952_v41 }
 0x4f2   :  { %v2058_v6 = vpop.f32.mrf.mxu1 }
 0x4f3   :  { %v2059_v7 = vadd.f32 %v2259_v50, %v2058_v6 }
 0x4f4   :  { %v2493_v38 = vpop.f32.mrf.mxu1 }
 0x4f5   :  { %2065 = vst.msk [vmem:[#allocation4] sm:$0x3] %vm2064_vm5, %v2059_v7 }
 0x4f6   :  { %v2061_v39 = vpop.f32.mrf.mxu1 }
 0x4f7   :  { %2558 = shalt.err (!%p2555_p4)
}
 0x4f8   :  { %2075 = dma.vmem_to_hbm [thread:$0]  %s2073_s14, 32, %s3667_s11, [#allocation5]   ;;  %v2494_v4 = vpop.f32.mrf.mxu1 }
 0x4f9   :  { %2569 = dma.done.wait [#allocation5], 32  }
 0x4fa   :  { %2570 = vsyncadd [#allocation5], 4294967264 }
 0x4fb   :  { %2079 = vsyncpa [#allocation5], 1 }
 0x4fc   :  { %2080 = vsyncmov [#allocation3] }
 0x4ff   :  { %s2081_s10 = vpop.sfrf %2080 }
 0x500   :  { %p2268_p5 = scmp.ne.s32.totalorder %s2081_s10, 0 }
 0x502   :  { %2085 = shalt.err (%p2268_p5)  }

</bundles_post_ra>
